<compile_context>
chip_gen: v7x
topology: tpu7x:2x2x1
jax: 0.10.0
libtpu: 0.0.40
codegen_flags: <defaults>
</compile_context>

<pallas_src>
import functools
import math

import jax
import jax.numpy as jnp
from jax import lax
from jax.experimental import pallas as pl
from jax.experimental.pallas import tpu as pltpu


_VMEM_LIMIT_BYTES = 48 * 1024 * 1024   # fits v5e/v6e (128 MiB) and v7x (64 MiB)


def _largest_divisor(total, target):
    """Largest divisor of `total` that is <= target (>= 1)."""
    target = max(1, min(total, target))
    for t in range(target, 0, -1):
        if total % t == 0:
            return t
    return 1


# ----------------------------------------------------------------------------
# GroupNorm statistics kernel (tiled reduction over spatial)
# ----------------------------------------------------------------------------
def _gn_stats_kernel(x_ref, sum_ref, sq_ref):
    """Accumulate per-channel sum / sum-of-squares across spatial tiles."""
    x = x_ref[0].astype(jnp.float32)                    # (TS, C)
    ps = jnp.sum(x, axis=0, keepdims=True)              # (1, C)
    pq = jnp.sum(x * x, axis=0, keepdims=True)          # (1, C)

    @pl.when(pl.program_id(1) == 0)
    def _():
        sum_ref[0] = ps
        sq_ref[0] = pq

    @pl.when(pl.program_id(1) != 0)
    def _():
        sum_ref[0] = sum_ref[0] + ps
        sq_ref[0] = sq_ref[0] + pq


def _gn_scale_shift(x, gamma, beta, groups, eps=1e-5):
    """Fold PyTorch GroupNorm into per-(sample, channel) scale/shift (f32)."""
    N, D, H, W, C = x.shape
    S = D * H * W
    xf = x.reshape(N, S, C)
    TS = _largest_divisor(S, 2048)
    n_s = S // TS
    sums, sqs = pl.pallas_call(
        _gn_stats_kernel,
        out_shape=(jax.ShapeDtypeStruct((N, 1, C), jnp.float32),
                   jax.ShapeDtypeStruct((N, 1, C), jnp.float32)),
        grid=(N, n_s),
        in_specs=[pl.BlockSpec((1, TS, C), lambda n, s: (n, s, 0))],
        out_specs=(pl.BlockSpec((1, 1, C), lambda n, s: (n, 0, 0)),
                   pl.BlockSpec((1, 1, C), lambda n, s: (n, 0, 0))),
        compiler_params=pltpu.CompilerParams(
            dimension_semantics=("parallel", "arbitrary"),
            vmem_limit_bytes=_VMEM_LIMIT_BYTES),
    )(xf)
    cg = C // groups
    cnt = float(S * cg)
    gsum = sums.reshape(N, groups, cg).sum(axis=-1)      # (N, G)
    gsq = sqs.reshape(N, groups, cg).sum(axis=-1)        # (N, G)
    mean = gsum / cnt
    # TODO(synk): E[x^2]-mean^2 can cancel for very large volumes; switch to a
    # two-pass (subtract-mean) reduction if tolerance ever becomes an issue.
    var = jnp.maximum(gsq / cnt - mean * mean, 0.0)
    inv = lax.rsqrt(var + eps)
    mean_c = jnp.repeat(mean, cg, axis=-1)               # (N, C)
    inv_c = jnp.repeat(inv, cg, axis=-1)                 # (N, C)
    scale = inv_c * gamma[None, :]
    shift = beta[None, :] - mean_c * scale
    return scale.reshape(N, 1, C), shift.reshape(N, 1, C)


# ----------------------------------------------------------------------------
# Fused GroupNorm-affine + Conv3d(3x3x3, pad=1, no bias) + ReLU kernel
# ----------------------------------------------------------------------------
def _gn_conv3x3_relu_kernel(xm_ref, xt_ref, xb_ref, scale_ref, shift_ref,
                            w_ref, o_ref, xpad_ref, acc_ref, *,
                            td, hh, ww, relu):
    i = pl.program_id(1)
    n_d = pl.num_programs(1)
    cin = xm_ref.shape[-1]
    cout = o_ref.shape[-1]
    hp, wp = hh + 2, ww + 2

    scale = scale_ref[...].reshape(1, 1, 1, cin)          # f32
    shift = shift_ref[...].reshape(1, 1, 1, cin)

    # Zero the halo'd scratch every step: keeps the (GroupNorm'd then zero-
    # padded) border semantics exact, independent of megacore grid chunking.
    xpad_ref[...] = jnp.zeros((td + 2, hp, wp, cin), jnp.float32)

    # Normalize-at-fill: GN affine applied in f32 while staging into the scratch.
    xm = xm_ref[0].astype(jnp.float32)                    # (td, hh, ww, cin)
    xpad_ref[1:td + 1, 1:hh + 1, 1:ww + 1, :] = xm * scale + shift

    @pl.when(i > 0)
    def _():   # top D-halo plane (otherwise stays zero == conv padding)
        xt = xt_ref[0].astype(jnp.float32)                # (1, hh, ww, cin)
        xpad_ref[0:1, 1:hh + 1, 1:ww + 1, :] = xt * scale + shift

    @pl.when(i < n_d - 1)
    def _():   # bottom D-halo plane
        xb = xb_ref[0].astype(jnp.float32)
        xpad_ref[td + 1:td + 2, 1:hh + 1, 1:ww + 1, :] = xb * scale + shift

    # Direct conv: fold the 3 kw taps into the contraction dim (K = 3*cin).
    # 9 MXU matmuls, bf16 operands, f32 accumulation in a VMEM scratch.
    s_rows = td * hh * ww
    for kd in range(3):
        for kh in range(3):
            z = xpad_ref[kd:kd + td, kh:kh + hh, :, :]     # (td, hh, wp, cin)
            zz = jnp.concatenate(
                [z[:, :, 0:ww, :], z[:, :, 1:ww + 1, :], z[:, :, 2:ww + 2, :]],
                axis=-1).astype(jnp.bfloat16).reshape(s_rows, 3 * cin)
            part = jnp.dot(zz, w_ref[kd, kh],
                           preferred_element_type=jnp.float32)
            if kd == 0 and kh == 0:
                acc_ref[...] = part
            else:
                acc_ref[...] = acc_ref[...] + part

    acc = acc_ref[...]
    if relu:
        acc = jnp.maximum(acc, 0.0)                       # f32 epilogue
    o_ref[0] = acc.reshape(td, hh, ww, cout).astype(o_ref.dtype)


def gn_conv3x3_relu(x, scale, shift, w, *, relu=True):
    """Fused (GroupNorm affine) -> Conv3d(3x3x3, pad=1, bias=False) -> ReLU.

    x: (N, D, H, W, Cin) f32;  scale/shift: (N, 1, Cin) f32;
    w: (3, 3, 3, Cin, Cout) f32.
    """
    N, D, H, W, Cin = x.shape
    Cout = w.shape[-1]
    td = _largest_divisor(D, max(1, 2048 // (H * W)))     # ~2k-row MXU tiles
    n_d = D // td
    wk = w.astype(jnp.bfloat16).reshape(3, 3, 3 * Cin, Cout)

    kernel = functools.partial(_gn_conv3x3_relu_kernel,
                               td=td, hh=H, ww=W, relu=relu)
    return pl.pallas_call(
        kernel,
        out_shape=jax.ShapeDtypeStruct((N, D, H, W, Cout), x.dtype),
        grid=(N, n_d),
        in_specs=[
            # main D-slab of the tile
            pl.BlockSpec((1, td, H, W, Cin), lambda n, i: (n, i, 0, 0, 0)),
            # 1-plane top / bottom halos (clamped in-bounds; ignored at edges)
            pl.BlockSpec((1, 1, H, W, Cin),
                         lambda n, i: (n, jnp.maximum(i * td - 1, 0), 0, 0, 0)),
            pl.BlockSpec((1, 1, H, W, Cin),
                         lambda n, i: (n, jnp.minimum(i * td + td, D - 1),
                                       0, 0, 0)),
            pl.BlockSpec((1, 1, Cin), lambda n, i: (n, 0, 0)),
            pl.BlockSpec((1, 1, Cin), lambda n, i: (n, 0, 0)),
            pl.BlockSpec((3, 3, 3 * Cin, Cout), lambda n, i: (0, 0, 0, 0)),
        ],
        out_specs=pl.BlockSpec((1, td, H, W, Cout),
                               lambda n, i: (n, i, 0, 0, 0)),
        scratch_shapes=[
            pltpu.VMEM((td + 2, H + 2, W + 2, Cin), jnp.float32),  # halo'd input
            pltpu.VMEM((td * H * W, Cout), jnp.float32),           # accumulator
        ],
        compiler_params=pltpu.CompilerParams(
            dimension_semantics=("parallel", "parallel"),
            vmem_limit_bytes=_VMEM_LIMIT_BYTES),
    )(x, x, x, scale, shift, wk)


# ----------------------------------------------------------------------------
# Final 1x1x1 conv (+bias) as a tiled matmul kernel
# ----------------------------------------------------------------------------
def _pointwise_conv_kernel(x_ref, w_ref, b_ref, o_ref):
    y = jnp.dot(x_ref[0], w_ref[...], preferred_element_type=jnp.float32)
    o_ref[0] = (y + b_ref[...]).astype(o_ref.dtype)


def conv1x1(x, w, b):
    """x: (N, D, H, W, Cin); w: (1,1,1,Cin,Cout); b: (Cout,)."""
    N, D, H, W, Cin = x.shape
    w2 = w.reshape(Cin, -1).astype(jnp.float32)
    Cout = w2.shape[-1]
    S = D * H * W
    TS = _largest_divisor(S, 2048)
    xf = x.reshape(N, S, Cin)
    out = pl.pallas_call(
        _pointwise_conv_kernel,
        out_shape=jax.ShapeDtypeStruct((N, S, Cout), x.dtype),
        grid=(N, S // TS),
        in_specs=[
            pl.BlockSpec((1, TS, Cin), lambda n, s: (n, s, 0)),
            pl.BlockSpec((Cin, Cout), lambda n, s: (0, 0)),
            pl.BlockSpec((1, Cout), lambda n, s: (0, 0)),
        ],
        out_specs=pl.BlockSpec((1, TS, Cout), lambda n, s: (n, s, 0)),
        compiler_params=pltpu.CompilerParams(
            dimension_semantics=("parallel", "parallel"),
            vmem_limit_bytes=_VMEM_LIMIT_BYTES),
    )(xf, w2, b.reshape(1, Cout).astype(jnp.float32))
    return out.reshape(N, D, H, W, Cout)


# ----------------------------------------------------------------------------
# Plain-JAX glue (data movement only)
# ----------------------------------------------------------------------------
def _max_pool3d_2x(x):
    N, D, H, W, C = x.shape
    return x.reshape(N, D // 2, 2, H // 2, 2, W // 2, 2, C).max(axis=(2, 4, 6))


def _upsample_nearest_2x(x):
    # nearest-neighbour 2x == single broadcast + reshape (one fused XLA op).
    N, D, H, W, C = x.shape
    y = jnp.broadcast_to(x[:, :, None, :, None, :, None, :],
                         (N, D, 2, H, 2, W, 2, C))
    return y.reshape(N, 2 * D, 2 * H, 2 * W, C)


# ----------------------------------------------------------------------------
# Parameters (deterministic, synthetic)
# ----------------------------------------------------------------------------
def create_feature_maps(init_channel_number, number_of_fmaps):
    return [init_channel_number * 2 ** k for k in range(number_of_fmaps)]


def _gn_groups(num_channels, num_groups):
    return num_groups if num_channels >= num_groups else 1


def _single_conv_params(key, in_ch, out_ch, num_groups, k=3):
    fan_in = in_ch * k ** 3
    w = jax.random.normal(key, (k, k, k, in_ch, out_ch), jnp.float32) / math.sqrt(fan_in)
    return dict(
        groups=_gn_groups(in_ch, num_groups),
        gamma=jnp.ones((in_ch,), jnp.float32),
        beta=jnp.zeros((in_ch,), jnp.float32),
        w=w,
    )


def _double_conv_params(key, in_ch, out_ch, encoder, num_groups):
    if encoder:
        c1_in, c1_out = in_ch, out_ch // 2
        if c1_out < in_ch:
            c1_out = in_ch
        c2_in, c2_out = c1_out, out_ch
    else:
        c1_in, c1_out = in_ch, out_ch
        c2_in, c2_out = out_ch, out_ch
    k1, k2 = jax.random.split(key)
    return [_single_conv_params(k1, c1_in, c1_out, num_groups),
            _single_conv_params(k2, c2_in, c2_out, num_groups)]


def init_unet3d_params(key, in_channels, out_channels, f_maps=64, num_groups=8):
    if isinstance(f_maps, int):
        f_maps = create_feature_maps(f_maps, number_of_fmaps=4)
    n_keys = len(f_maps) + (len(f_maps) - 1) + 1
    keys = iter(jax.random.split(key, n_keys))
    encoders = []
    for i, out_f in enumerate(f_maps):
        in_f = in_channels if i == 0 else f_maps[i - 1]
        encoders.append(_double_conv_params(next(keys), in_f, out_f, True, num_groups))
    decoders = []
    rf = list(reversed(f_maps))
    for i in range(len(rf) - 1):
        decoders.append(
            _double_conv_params(next(keys), rf[i] + rf[i + 1], rf[i + 1], False, num_groups))
    kf = next(keys)
    final_w = (jax.random.normal(kf, (1, 1, 1, f_maps[0], out_channels), jnp.float32)
               / math.sqrt(f_maps[0]))
    final_b = jnp.zeros((out_channels,), jnp.float32)
    return dict(encoders=encoders, decoders=decoders,
                final_w=final_w, final_b=final_b)


# ----------------------------------------------------------------------------
# Forward pass (mirrors UNet3D.forward, layer_order='gcr', testing=False)
# ----------------------------------------------------------------------------
def _single_conv(x, p):
    # 'g' -> 'c' -> 'r' with the GroupNorm affine folded into the conv kernel.
    scale, shift = _gn_scale_shift(x, p['gamma'], p['beta'], p['groups'])
    return gn_conv3x3_relu(x, scale, shift, p['w'], relu=True)


def _double_conv(x, dc):
    x = _single_conv(x, dc[0])
    x = _single_conv(x, dc[1])
    return x


def unet3d_forward(params, x_ncdhw):
    x = jnp.transpose(x_ncdhw, (0, 2, 3, 4, 1))              # NCDHW -> NDHWC
    enc_feats = []
    for i, enc in enumerate(params['encoders']):
        if i > 0:
            x = _max_pool3d_2x(x)                            # MaxPool3d(2)
        x = _double_conv(x, enc)
        enc_feats.insert(0, x)
    enc_feats = enc_feats[1:]
    for dec, feat in zip(params['decoders'], enc_feats):
        x = _upsample_nearest_2x(x)                          # interpolate to skip size
        # TODO(synk): upsample+concat still materialize one HBM buffer; fusing the
        # dual-resolution inputs directly into the conv pipeline is not implemented.
        x = jnp.concatenate([feat, x], axis=-1)              # cat((enc, x), dim=1)
        x = _double_conv(x, dec)
    x = conv1x1(x, params['final_w'], params['final_b'])     # final 1x1x1 conv
    # TODO(synk): final_activation (Sigmoid/Softmax) only runs when testing=True; default skips it.
    return jnp.transpose(x, (0, 4, 1, 2, 3))                 # NDHWC -> NCDHW


# ----------------------------------------------------------------------------
if __name__ == "__main__":
    key = jax.random.PRNGKey(0)
    pkey, xkey = jax.random.split(key)
    in_channels, out_channels = 4, 2
    params = init_unet3d_params(pkey, in_channels, out_channels, f_maps=8, num_groups=8)
    x = jax.random.normal(xkey, (2, in_channels, 16, 16, 16), jnp.float32)
    y = unet3d_forward(params, x)
    jax.block_until_ready(y)
    assert y.shape == (2, out_channels, 16, 16, 16)
    assert jnp.all(jnp.isfinite(y))
    print("KERNEL_OK")
</pallas_src>

<mosaic_0001>
module attributes {stable_mosaic.version = 11 : i64} {
  func.func @_gn_stats_kernel(%arg0: i32, %arg1: i32, %arg2: memref<1x2048x4xf32, #tpu.memory_space<vmem>>, %arg3: memref<1x1x4xf32, #tpu.memory_space<vmem>>, %arg4: memref<1x1x4xf32, #tpu.memory_space<vmem>>) attributes {dimension_semantics = [#tpu.dimension_semantics<parallel>, #tpu.dimension_semantics<arbitrary>], iteration_bounds = array<i64: 2, 2>, scalar_prefetch = 0 : i64, scratch_operands = 0 : i64, tpu.core_type = #tpu.core_type<tc>, window_params = [{transform_indices = @transform_0, window_bounds = array<i64: 1, 2048, 4>}, {transform_indices = @transform_1, window_bounds = array<i64: 1, 1, 4>}, {transform_indices = @transform_2, window_bounds = array<i64: 1, 1, 4>}]} {
    %c0 = arith.constant 0 : index
    %c0_0 = arith.constant 0 : index
    %c0_1 = arith.constant 0 : index
    %0 = vector.load %arg2[%c0, %c0_0, %c0_1] : memref<1x2048x4xf32, #tpu.memory_space<vmem>>, vector<1x2048x4xf32>
    %1 = vector.shape_cast %0 : vector<1x2048x4xf32> to vector<2048x4xf32>
    %cst = arith.constant dense<0.000000e+00> : vector<4xf32>
    %2 = vector.multi_reduction <add>, %1, %cst [0] : vector<2048x4xf32> to vector<4xf32>
    %3 = vector.shape_cast %2 : vector<4xf32> to vector<1x4xf32>
    %4 = arith.mulf %1, %1 : vector<2048x4xf32>
    %cst_2 = arith.constant dense<0.000000e+00> : vector<4xf32>
    %5 = vector.multi_reduction <add>, %4, %cst_2 [0] : vector<2048x4xf32> to vector<4xf32>
    %6 = vector.shape_cast %5 : vector<4xf32> to vector<1x4xf32>
    %c0_i32 = arith.constant 0 : i32
    %7 = arith.cmpi eq, %arg1, %c0_i32 : i32
    %8 = arith.extui %7 : i1 to i32
    %c0_i32_3 = arith.constant 0 : i32
    %9 = arith.cmpi ne, %8, %c0_i32_3 : i32
    scf.if %9 {
      %c0_6 = arith.constant 0 : index
      %c0_7 = arith.constant 0 : index
      %c0_8 = arith.constant 0 : index
      %13 = vector.load %arg3[%c0_6, %c0_7, %c0_8] : memref<1x1x4xf32, #tpu.memory_space<vmem>>, vector<1x1x4xf32>
      %14 = vector.shape_cast %13 : vector<1x1x4xf32> to vector<1x4xf32>
      %15 = vector.shape_cast %3 : vector<1x4xf32> to vector<1x1x4xf32>
      tpu.vector_store %arg3[%c0_6, %c0_7, %c0_8], %15 {strides = array<i32>} : memref<1x1x4xf32, #tpu.memory_space<vmem>>, vector<1x1x4xf32>,
      %c0_9 = arith.constant 0 : index
      %c0_10 = arith.constant 0 : index
      %c0_11 = arith.constant 0 : index
      %16 = vector.load %arg4[%c0_9, %c0_10, %c0_11] : memref<1x1x4xf32, #tpu.memory_space<vmem>>, vector<1x1x4xf32>
      %17 = vector.shape_cast %16 : vector<1x1x4xf32> to vector<1x4xf32>
      %18 = vector.shape_cast %6 : vector<1x4xf32> to vector<1x1x4xf32>
      tpu.vector_store %arg4[%c0_9, %c0_10, %c0_11], %18 {strides = array<i32>} : memref<1x1x4xf32, #tpu.memory_space<vmem>>, vector<1x1x4xf32>,
    } else {
    }
    %c0_i32_4 = arith.constant 0 : i32
    %10 = arith.cmpi ne, %arg1, %c0_i32_4 : i32
    %11 = arith.extui %10 : i1 to i32
    %c0_i32_5 = arith.constant 0 : i32
    %12 = arith.cmpi ne, %11, %c0_i32_5 : i32
    scf.if %12 {
      %c0_6 = arith.constant 0 : index
      %c0_7 = arith.constant 0 : index
      %c0_8 = arith.constant 0 : index
      %13 = vector.load %arg3[%c0_6, %c0_7, %c0_8] : memref<1x1x4xf32, #tpu.memory_space<vmem>>, vector<1x1x4xf32>
      %14 = vector.shape_cast %13 : vector<1x1x4xf32> to vector<1x4xf32>
      %15 = arith.addf %14, %3 : vector<1x4xf32>
      %c0_9 = arith.constant 0 : index
      %c0_10 = arith.constant 0 : index
      %c0_11 = arith.constant 0 : index
      %16 = vector.load %arg3[%c0_9, %c0_10, %c0_11] : memref<1x1x4xf32, #tpu.memory_space<vmem>>, vector<1x1x4xf32>
      %17 = vector.shape_cast %16 : vector<1x1x4xf32> to vector<1x4xf32>
      %18 = vector.shape_cast %15 : vector<1x4xf32> to vector<1x1x4xf32>
      tpu.vector_store %arg3[%c0_9, %c0_10, %c0_11], %18 {strides = array<i32>} : memref<1x1x4xf32, #tpu.memory_space<vmem>>, vector<1x1x4xf32>,
      %c0_12 = arith.constant 0 : index
      %c0_13 = arith.constant 0 : index
      %c0_14 = arith.constant 0 : index
      %19 = vector.load %arg4[%c0_12, %c0_13, %c0_14] : memref<1x1x4xf32, #tpu.memory_space<vmem>>, vector<1x1x4xf32>
      %20 = vector.shape_cast %19 : vector<1x1x4xf32> to vector<1x4xf32>
      %21 = arith.addf %20, %6 : vector<1x4xf32>
      %c0_15 = arith.constant 0 : index
      %c0_16 = arith.constant 0 : index
      %c0_17 = arith.constant 0 : index
      %22 = vector.load %arg4[%c0_15, %c0_16, %c0_17] : memref<1x1x4xf32, #tpu.memory_space<vmem>>, vector<1x1x4xf32>
      %23 = vector.shape_cast %22 : vector<1x1x4xf32> to vector<1x4xf32>
      %24 = vector.shape_cast %21 : vector<1x4xf32> to vector<1x1x4xf32>
      tpu.vector_store %arg4[%c0_15, %c0_16, %c0_17], %24 {strides = array<i32>} : memref<1x1x4xf32, #tpu.memory_space<vmem>>, vector<1x1x4xf32>,
    } else {
    }
    return
  }
  func.func @transform_0(%arg0: i32, %arg1: i32) -> (i32, i32, i32) {
    %c0_i32 = arith.constant 0 : i32
    %c0_i32_0 = arith.constant 0 : i32
    return %arg0, %arg1, %c0_i32 : i32, i32, i32
  }
  func.func @transform_1(%arg0: i32, %arg1: i32) -> (i32, i32, i32) {
    %c0_i32 = arith.constant 0 : i32
    %c0_i32_0 = arith.constant 0 : i32
    %c0_i32_1 = arith.constant 0 : i32
    return %arg0, %c0_i32, %c0_i32_0 : i32, i32, i32
  }
  func.func @transform_2(%arg0: i32, %arg1: i32) -> (i32, i32, i32) {
    %c0_i32 = arith.constant 0 : i32
    %c0_i32_0 = arith.constant 0 : i32
    %c0_i32_1 = arith.constant 0 : i32
    return %arg0, %c0_i32, %c0_i32_0 : i32, i32, i32
  }
}

</mosaic_0001>

<bundles_post_ra>
// kernel: tpu_custom_call.1
= control target key start
LH: loop header
LB: loop body
LE: loop exit
PB: predicated region body
PF: predicated region fallthrough
CT: control target
= control target key end

     0   :  { %8 = vsyncpa [#allocation3], 0  ;;  %s4330_s0 = inlined_call_operand.vmem [shape: f32[2,4096,4], index: 0, kind: input, shape index: {}]   ;;  %s4331_s1 = inlined_call_operand.hbm [shape: f32[2,1,4], index: 1, kind: output, shape index: {0}]   ;;  %s4332_s2 = inlined_call_operand.hbm [shape: f32[2,1,4], index: 2, kind: output, shape index: {1}]  }
   0x1   :  { %10 = vsyncpa [#allocation3 + $0x1], 0 }
   0x2   :  { %11 = vsyncpa [#allocation5], 0 }
   0x3   :  { %13 = vsyncpa [#allocation5 + $0x1], 0  ;;  %s2109_s9 = smov 0   ;;  %s2111_s10 = smov 0  }
   0x4   :  { %s2113_s11 = smov 0   ;;  %s2115_s12 = smov 0  }
   0x5   :  { %s2117_s13 = smov 0   ;;  %s2119_s14 = smov 0  }
   0x6   :  { %s2121_s15 = smov 0   ;;  %s2123_s16 = smov 0  }
   0x7 LB: > { %s1874_s17 = sadd.s32 4294967295, %s2090_s16   ;;  %s1875_s18 = sadd.s32 4294967294, %s2090_s16   ;;  %s2090_s16 = sphi %s2123_s16, %s19_s16   ;;  %s2086_s15 = sphi %s2121_s15, %s4341_s15   ;;  %s2082_s14 = sphi %s2119_s14, %s4340_s14   ;;  %s2078_s13 = sphi %s2117_s13, %s4339_s13   ;;  %s2074_s12 = sphi %s2115_s12, %s4338_s12   ;;  %s2070_s11 = sphi %s2113_s11, %s4337_s11   ;;  %s2066_s10 = sphi %s2111_s10, %s4336_s10   ;;  %s2062_s9 = sphi %s2109_s9, %s4335_s9  }
   0x8   : > { %s28_s19 = sadd.s32 1, %s2082_s14  ;;  %s31_s20 = sadd.s32 1, %s2086_s15 }
   0x9   : > { %p29_p0 = scmp.ge.s32.totalorder %s28_s19, 2  ;;  %p76_p1 = scmp.ne.s32.totalorder %s2070_s11, %s2066_s10 }
   0xa   : > { %p77_p2 = scmp.eq.s32.totalorder %s1874_s17, 3  ;;  %p82_p4 = scmp.ne.s32.totalorder %s2066_s10, %s2062_s9 }
   0xb   : > { %s4343_s19 = smov (%p29_p0, %s28_s19), 0  ;;  %s4345_s20 = smov (!%p29_p0, %s31_s20), %s2086_s15 }
   0xc   : > { %p2158_p3 = por %p77_p2, %p76_p1  ;;  %p33_p5 = scmp.ge.s32.totalorder %s4345_s20, 2 }
   0xd   : > { %p83_p6 = scmp.eq.s32.totalorder %s1875_s18, 3  ;;  %p1878_p7 = scmp.ge.s32.totalorder %s2090_s16, 1 }
   0xe   : > { %p140_p8 = scmp.lt.s32.totalorder %s2090_s16, 5  ;;  %s4347_s20 = smov (%p33_p5, %s4345_s20), 0 }
   0xf   : > { %p2168_p9 = por %p83_p6, %p82_p4  ;;  %s63_s23 = ssub.s32 %s2086_s15, %s4347_s20 }
  0x10   : > { %p141_p10 = pnand %p1878_p7, %p140_p8  ;;  %s66_s24 = sadd.s32 1, %s2070_s11 }
  0x11   : > { %p64_p11 = scmp.eq.s32.totalorder %s63_s23, 0  ;;  %s2179_s26 = sand.u32 (!%p141_p10), 1, %s2066_s10   ;;  %vm435_vm0 = vcmask (!%p141_p10), 31744  }
  0x12   : > { %144 = sbr.rel (%p141_p10) target bundleno = 654 (0x28e), region = 24  ;;  %s1879_s27 = sshll.u32 (!%p141_p10), %s2074_s12, 8 }
  0x13   : > { %s2176_s25 = scalar_select %p64_p11, %s2070_s11, %s66_s24  }
  0x14   : > { %p170_p12 = scmp.lt.s32.totalorder (!%p141_p10), %s2078_s13, 1  ;;  %p172_p13 = scmp.lt.s32.totalorder (!%p141_p10), %s1879_s27, 511 }
  0x15   : > { %s162_s7 = scalar_lea.vmem (!%p141_p10), [#allocation2], %s2179_s26  ;;  %s4241_s8 = scalar_lea.vmem (!%p141_p10), [#allocation4], %s2179_s26 }
  0x16   : > { %p1882_p0 = scmp.ne.s32.totalorder (!%p141_p10), %s2074_s12, 0 }
  0x19   : > { %s171_s28 = scalar_select %p170_p12, %s2078_s13, 1 }
  0x1a   : > { %s4349_s27 = smov (!%p172_p13, %s1879_s27), 511  ;;  %vm1730_vm1 = vcmask (!%p1882_p0), 24576  }
  0x1b   : > { %s1880_s29 = sshll.u32 %s171_s28, 9 }
  0x1c   : > { %s175_s30 = sadd.s32 %s1880_s29, %s4349_s27 }
  0x1d   : > { %s1881_s3 = sshll.u32 %s175_s30, 3 }
  0x1e   : > { %s2187_s6 = scalar_lea.vmem %s4330_s0, %s1881_s3 }
  0x1f   : > { %v2190_v0 = vld [vmem:[%s2187_s6] sm:$0xff]  ;;  %v2193_v1 = vld [vmem:[%s2187_s6 + $0x8] sm:$0xff]  ;;  %v2196_v2 = vld [vmem:[%s2187_s6 + $0x10] sm:$0xff] }
  0x20   : > { %v436_v3 = vsel %vm435_vm0, %v2190_v0, 0.0  ;;  %v437_v4 = vsel %vm435_vm0, %v2193_v1, 0.0  ;;  %v439_v5 = vsel %vm435_vm0, %v2196_v2, 0.0  ;;  %v2205_v6 = vld [vmem:[%s2187_s6 + $0x18] sm:$0xff]  ;;  %v2210_v9 = vld [vmem:[%s2187_s6 + $0x20] sm:$0xff]  ;;  %v2215_v12 = vld [vmem:[%s2187_s6 + $0x28] sm:$0xff] }
  0x21   : > { %v438_v7 = vadd.f32 %v437_v4, %v436_v3  ;;  %v441_v8 = vsel %vm435_vm0, %v2205_v6, 0.0  ;;  %v443_v11 = vsel %vm435_vm0, %v2210_v9, 0.0  ;;  %v445_v14 = vsel %vm435_vm0, %v2215_v12, 0.0  ;;  %v2220_v15 = vld [vmem:[%s2187_s6 + $0x30] sm:$0xff]  ;;  %v2225_v18 = vld [vmem:[%s2187_s6 + $0x38] sm:$0xff]  ;;  %v2230_v21 = vld [vmem:[%s2187_s6 + $0x40] sm:$0xff] }
  0x22   : > { %v447_v17 = vsel %vm435_vm0, %v2220_v15, 0.0  ;;  %v449_v20 = vsel %vm435_vm0, %v2225_v18, 0.0  ;;  %v451_v23 = vsel %vm435_vm0, %v2230_v21, 0.0  ;;  %v2235_v24 = vld [vmem:[%s2187_s6 + $0x48] sm:$0xff]  ;;  %v2240_v27 = vld [vmem:[%s2187_s6 + $0x50] sm:$0xff]  ;;  %v2245_v30 = vld [vmem:[%s2187_s6 + $0x58] sm:$0xff] }
  0x23   : > { %v440_v10 = vadd.f32 %v439_v5, %v438_v7  ;;  %v453_v26 = vsel %vm435_vm0, %v2235_v24, 0.0  ;;  %v455_v29 = vsel %vm435_vm0, %v2240_v27, 0.0  ;;  %v457_v32 = vsel %vm435_vm0, %v2245_v30, 0.0  ;;  %v2250_v33 = vld [vmem:[%s2187_s6 + $0x60] sm:$0xff]  ;;  %v2255_v36 = vld [vmem:[%s2187_s6 + $0x68] sm:$0xff]  ;;  %v2260_v39 = vld [vmem:[%s2187_s6 + $0x70] sm:$0xff] }
  0x24   : > { %v459_v35 = vsel %vm435_vm0, %v2250_v33, 0.0  ;;  %v461_v38 = vsel %vm435_vm0, %v2255_v36, 0.0  ;;  %v463_v41 = vsel %vm435_vm0, %v2260_v39, 0.0  ;;  %v2265_v42 = vld [vmem:[%s2187_s6 + $0x78] sm:$0xff]  ;;  %v2270_v45 = vld [vmem:[%s2187_s6 + $0x80] sm:$0xff]  ;;  %v2275_v48 = vld [vmem:[%s2187_s6 + $0x88] sm:$0xff] }
  0x25   : > { %v442_v13 = vadd.f32 %v441_v8, %v440_v10  ;;  %v465_v44 = vsel %vm435_vm0, %v2265_v42, 0.0  ;;  %v467_v47 = vsel %vm435_vm0, %v2270_v45, 0.0  ;;  %v469_v50 = vsel %vm435_vm0, %v2275_v48, 0.0  ;;  %v2280_v51 = vld [vmem:[%s2187_s6 + $0x90] sm:$0xff]  ;;  %v2285_v54 = vld [vmem:[%s2187_s6 + $0x98] sm:$0xff]  ;;  %v2290_v57 = vld [vmem:[%s2187_s6 + $0xa0] sm:$0xff] }
  0x26   : > { %v471_v53 = vsel %vm435_vm0, %v2280_v51, 0.0  ;;  %v473_v56 = vsel %vm435_vm0, %v2285_v54, 0.0  ;;  %v475_v59 = vsel %vm435_vm0, %v2290_v57, 0.0  ;;  %v2295_v60 = vld [vmem:[%s2187_s6 + $0xa8] sm:$0xff]  ;;  %v2300_v63 = vld [vmem:[%s2187_s6 + $0xb0] sm:$0xff]  ;;  %v2305_v5 = vld [vmem:[%s2187_s6 + $0xb8] sm:$0xff] }
  0x27   : > { %v444_v16 = vadd.f32 %v443_v11, %v442_v13  ;;  %v477_v62 = vsel %vm435_vm0, %v2295_v60, 0.0  ;;  %v479_v4 = vsel %vm435_vm0, %v2300_v63, 0.0  ;;  %v481_v8 = vsel %vm435_vm0, %v2305_v5, 0.0  ;;  %v2310_v10 = vld [vmem:[%s2187_s6 + $0xc0] sm:$0xff] }
  0x28   : > { %v483_v13 = vsel %vm435_vm0, %v2310_v10, 0.0 }
  0x29   : > { %v446_v19 = vadd.f32 %v445_v14, %v444_v16  ;;  %v2315_v14 = vld [vmem:[%s2187_s6 + $0xc8] sm:$0xff] }
  0x2b   : > { %v448_v22 = vadd.f32 %v447_v17, %v446_v19  ;;  %v485_v17 = vsel %vm435_vm0, %v2315_v14, 0.0  ;;  %v2320_v19 = vld [vmem:[%s2187_s6 + $0xd0] sm:$0xff] }
  0x2d   : > { %v450_v25 = vadd.f32 %v449_v20, %v448_v22  ;;  %v487_v22 = vsel %vm435_vm0, %v2320_v19, 0.0 }
  0x2f   : > { %v452_v28 = vadd.f32 %v451_v23, %v450_v25  ;;  %v953_v23 = vmul.f32 %v2190_v0, %v2190_v0  ;;  %v954_v25 = vmul.f32 %v2193_v1, %v2193_v1  ;;  %v957_v0 = vmul.f32 %v2210_v9, %v2210_v9 }
  0x30   : > { %v958_v9 = vmul.f32 %v2215_v12, %v2215_v12 }
  0x31   : > { %v454_v31 = vadd.f32 %v453_v26, %v452_v28  ;;  %v955_v26 = vmul.f32 %v2196_v2, %v2196_v2  ;;  %v2331_v28 = vld [vmem:[%s2187_s6 + $0xd8] sm:$0xff]  ;;  %v1209_v2 = vsel %vm435_vm0, %v953_v23, 0.0 }
  0x33   : > { %v456_v34 = vadd.f32 %v455_v29, %v454_v31  ;;  %v489_v31 = vsel %vm435_vm0, %v2331_v28, 0.0 }
  0x35   : > { %v458_v37 = vadd.f32 %v457_v32, %v456_v34  ;;  %v956_v32 = vmul.f32 %v2205_v6, %v2205_v6  ;;  %v2338_v34 = vld [vmem:[%s2187_s6 + $0xe0] sm:$0xff] }
  0x36   : > { %v491_v1 = vsel %vm435_vm0, %v2338_v34, 0.0 }
  0x37   : > { %v460_v40 = vadd.f32 %v459_v35, %v458_v37  ;;  %v1210_v37 = vsel %vm435_vm0, %v954_v25, 0.0 }
  0x38   : > { %v1211_v6 = vadd.f32 %v1210_v37, %v1209_v2  ;;  %v2404_v2 = vld [vmem:[%s2187_s6 + $0x120] sm:$0xff] }
  0x39   : > { %v462_v43 = vadd.f32 %v461_v38, %v460_v40  ;;  %v1212_v38 = vsel %vm435_vm0, %v955_v26, 0.0  ;;  %v2348_v40 = vld [vmem:[%s2187_s6 + $0xe8] sm:$0xff]  ;;  %v963_v26 = vmul.f32 %v2240_v27, %v2240_v27  ;;  %v507_v27 = vsel %vm435_vm0, %v2404_v2, 0.0 }
  0x3b   : > { %v464_v46 = vadd.f32 %v463_v41, %v462_v43  ;;  %v493_v43 = vsel %vm435_vm0, %v2348_v40, 0.0 }
  0x3d   : > { %v466_v49 = vadd.f32 %v465_v44, %v464_v46  ;;  %v1214_v44 = vsel %vm435_vm0, %v956_v32, 0.0  ;;  %v2356_v46 = vld [vmem:[%s2187_s6 + $0xf0] sm:$0xff] }
  0x3f   : > { %v468_v52 = vadd.f32 %v467_v47, %v466_v49  ;;  %v1213_v49 = vadd.f32 %v1212_v38, %v1211_v6  ;;  %v1228_v6 = vsel %vm435_vm0, %v963_v26, 0.0 }
  0x41   : > { %v470_v55 = vadd.f32 %v469_v50, %v468_v52  ;;  %v495_v50 = vsel %vm435_vm0, %v2356_v46, 0.0  ;;  %v959_v52 = vmul.f32 %v2220_v15, %v2220_v15 }
  0x43   : > { %v472_v58 = vadd.f32 %v471_v53, %v470_v55  ;;  %v1216_v53 = vsel %vm435_vm0, %v957_v0, 0.0  ;;  %v2364_v55 = vld [vmem:[%s2187_s6 + $0xf8] sm:$0xff]  ;;  %v964_v0 = vmul.f32 %v2245_v30, %v2245_v30 }
  0x44   : > { %v497_v12 = vsel %vm435_vm0, %v2364_v55, 0.0 }
  0x45   : > { %v474_v61 = vadd.f32 %v473_v56, %v472_v58  ;;  %v1215_v58 = vadd.f32 %v1214_v44, %v1213_v49  ;;  %v1230_v49 = vsel %vm435_vm0, %v964_v0, 0.0 }
  0x47   : > { %v476_v3 = vadd.f32 %v475_v59, %v474_v61  ;;  %v960_v59 = vmul.f32 %v2225_v18, %v2225_v18  ;;  %v1218_v61 = vsel %vm435_vm0, %v958_v9, 0.0 }
  0x49   : > { %v478_v7 = vadd.f32 %v477_v62, %v476_v3  ;;  %v2372_v62 = vld [vmem:[%s2187_s6 + $0x100] sm:$0xff] }
  0x4a   : > { %v499_v15 = vsel %vm435_vm0, %v2372_v62, 0.0 }
  0x4b   : > { %v480_v11 = vadd.f32 %v479_v4, %v478_v7  ;;  %v1217_v4 = vadd.f32 %v1216_v53, %v1215_v58  ;;  %v961_v7 = vmul.f32 %v2230_v21, %v2230_v21 }
  0x4d   : > { %v482_v16 = vadd.f32 %v481_v8, %v480_v11  ;;  %v1220_v8 = vsel %vm435_vm0, %v959_v52, 0.0  ;;  %v2380_v11 = vld [vmem:[%s2187_s6 + $0x108] sm:$0xff] }
  0x4e   : > { %v501_v18 = vsel %vm435_vm0, %v2380_v11, 0.0 }
  0x4f   : > { %v484_v20 = vadd.f32 %v483_v13, %v482_v16  ;;  %v1219_v16 = vadd.f32 %v1218_v61, %v1217_v4 }
  0x51   : > { %v486_v29 = vadd.f32 %v485_v17, %v484_v20  ;;  %v962_v17 = vmul.f32 %v2235_v24, %v2235_v24  ;;  %v1222_v20 = vsel %vm435_vm0, %v960_v59, 0.0  ;;  %v1221_v25 = vadd.f32 %v1220_v8, %v1219_v16 }
  0x53   : > { %v488_v35 = vadd.f32 %v487_v22, %v486_v29  ;;  %v2388_v22 = vld [vmem:[%s2187_s6 + $0x110] sm:$0xff]  ;;  %v1224_v29 = vsel %vm435_vm0, %v961_v7, 0.0 }
  0x54   : > { %v503_v21 = vsel %vm435_vm0, %v2388_v22, 0.0 }
  0x55   : > { %v490_v41 = vadd.f32 %v489_v31, %v488_v35  ;;  %v2396_v31 = vld [vmem:[%s2187_s6 + $0x118] sm:$0xff]  ;;  %v1223_v35 = vadd.f32 %v1222_v20, %v1221_v25 }
  0x56   : > { %v505_v24 = vsel %vm435_vm0, %v2396_v31, 0.0 }
  0x57   : > { %v492_v47 = vadd.f32 %v491_v1, %v490_v41  ;;  %v1226_v1 = vsel %vm435_vm0, %v962_v17, 0.0  ;;  %v1225_v38 = vadd.f32 %v1224_v29, %v1223_v35  ;;  %v965_v41 = vmul.f32 %v2250_v33, %v2250_v33 }
  0x59   : > { %v494_v56 = vadd.f32 %v493_v43, %v492_v47  ;;  %v2412_v43 = vld [vmem:[%s2187_s6 + $0x128] sm:$0xff]  ;;  %v1227_v44 = vadd.f32 %v1226_v1, %v1225_v38  ;;  %v966_v47 = vmul.f32 %v2255_v36, %v2255_v36  ;;  %v1232_v58 = vsel %vm435_vm0, %v965_v41, 0.0 }
  0x5a   : > { %v509_v30 = vsel %vm435_vm0, %v2412_v43, 0.0 }
  0x5b   : > { %v496_v3 = vadd.f32 %v495_v50, %v494_v56  ;;  %v2420_v50 = vld [vmem:[%s2187_s6 + $0x130] sm:$0xff]  ;;  %v1229_v53 = vadd.f32 %v1228_v6, %v1227_v44  ;;  %v967_v56 = vmul.f32 %v2260_v39, %v2260_v39  ;;  %v1234_v4 = vsel %vm435_vm0, %v966_v47, 0.0 }
  0x5c   : > { %v511_v33 = vsel %vm435_vm0, %v2420_v50, 0.0 }
  0x5d   : > { %v498_v13 = vadd.f32 %v497_v12, %v496_v3  ;;  %v2428_v12 = vld [vmem:[%s2187_s6 + $0x138] sm:$0xff]  ;;  %v1231_v61 = vadd.f32 %v1230_v49, %v1229_v53  ;;  %v968_v3 = vmul.f32 %v2265_v42, %v2265_v42  ;;  %v1236_v16 = vsel %vm435_vm0, %v967_v56, 0.0 }
  0x5e   : > { %v513_v36 = vsel %vm435_vm0, %v2428_v12, 0.0 }
  0x5f   : > { %v500_v23 = vadd.f32 %v499_v15, %v498_v13  ;;  %v2436_v15 = vld [vmem:[%s2187_s6 + $0x140] sm:$0xff]  ;;  %v1233_v8 = vadd.f32 %v1232_v58, %v1231_v61  ;;  %v969_v13 = vmul.f32 %v2270_v45, %v2270_v45  ;;  %v1238_v25 = vsel %vm435_vm0, %v968_v3, 0.0 }
  0x60   : > { %v515_v39 = vsel %vm435_vm0, %v2436_v15, 0.0 }
  0x61   : > { %v502_v32 = vadd.f32 %v501_v18, %v500_v23  ;;  %v2444_v18 = vld [vmem:[%s2187_s6 + $0x148] sm:$0xff]  ;;  %v1235_v20 = vadd.f32 %v1234_v4, %v1233_v8  ;;  %v970_v23 = vmul.f32 %v2275_v48, %v2275_v48  ;;  %v1240_v35 = vsel %vm435_vm0, %v969_v13, 0.0 }
  0x62   : > { %v517_v42 = vsel %vm435_vm0, %v2444_v18, 0.0 }
  0x63   : > { %v504_v37 = vadd.f32 %v503_v21, %v502_v32  ;;  %v2452_v21 = vld [vmem:[%s2187_s6 + $0x150] sm:$0xff]  ;;  %v1237_v29 = vadd.f32 %v1236_v16, %v1235_v20  ;;  %v971_v32 = vmul.f32 %v2280_v51, %v2280_v51  ;;  %v1242_v38 = vsel %vm435_vm0, %v970_v23, 0.0 }
  0x64   : > { %v519_v45 = vsel %vm435_vm0, %v2452_v21, 0.0 }
  0x65   : > { %v506_v9 = vadd.f32 %v505_v24, %v504_v37  ;;  %v2460_v24 = vld [vmem:[%s2187_s6 + $0x158] sm:$0xff]  ;;  %v1239_v1 = vadd.f32 %v1238_v25, %v1237_v29  ;;  %v972_v37 = vmul.f32 %v2285_v54, %v2285_v54  ;;  %v1244_v44 = vsel %vm435_vm0, %v971_v32, 0.0 }
  0x66   : > { %v521_v48 = vsel %vm435_vm0, %v2460_v24, 0.0 }
  0x67   : > { %v508_v52 = vadd.f32 %v507_v27, %v506_v9  ;;  %v2468_v27 = vld [vmem:[%s2187_s6 + $0x160] sm:$0xff]  ;;  %v1241_v6 = vadd.f32 %v1240_v35, %v1239_v1  ;;  %v973_v9 = vmul.f32 %v2290_v57, %v2290_v57  ;;  %v1246_v53 = vsel %vm435_vm0, %v972_v37, 0.0 }
  0x68   : > { %v523_v51 = vsel %vm435_vm0, %v2468_v27, 0.0 }
  0x69   : > { %v510_v59 = vadd.f32 %v509_v30, %v508_v52  ;;  %v2476_v30 = vld [vmem:[%s2187_s6 + $0x168] sm:$0xff]  ;;  %v1243_v49 = vadd.f32 %v1242_v38, %v1241_v6  ;;  %v974_v52 = vmul.f32 %v2295_v60, %v2295_v60  ;;  %v1248_v61 = vsel %vm435_vm0, %v973_v9, 0.0 }
  0x6a   : > { %v525_v54 = vsel %vm435_vm0, %v2476_v30, 0.0 }
  0x6b   : > { %v512_v7 = vadd.f32 %v511_v33, %v510_v59  ;;  %v2484_v33 = vld [vmem:[%s2187_s6 + $0x170] sm:$0xff]  ;;  %v1245_v58 = vadd.f32 %v1244_v44, %v1243_v49  ;;  %v975_v59 = vmul.f32 %v2300_v63, %v2300_v63  ;;  %v1250_v8 = vsel %vm435_vm0, %v974_v52, 0.0 }
  0x6c   : > { %v527_v57 = vsel %vm435_vm0, %v2484_v33, 0.0 }
  0x6d   : > { %v514_v17 = vadd.f32 %v513_v36, %v512_v7  ;;  %v2492_v36 = vld [vmem:[%s2187_s6 + $0x178] sm:$0xff]  ;;  %v1247_v4 = vadd.f32 %v1246_v53, %v1245_v58  ;;  %v976_v7 = vmul.f32 %v2305_v5, %v2305_v5  ;;  %v1252_v20 = vsel %vm435_vm0, %v975_v59, 0.0 }
  0x6e   : > { %v529_v60 = vsel %vm435_vm0, %v2492_v36, 0.0 }
  0x6f   : > { %v516_v26 = vadd.f32 %v515_v39, %v514_v17  ;;  %v2500_v39 = vld [vmem:[%s2187_s6 + $0x180] sm:$0xff]  ;;  %v1249_v16 = vadd.f32 %v1248_v61, %v1247_v4  ;;  %v977_v17 = vmul.f32 %v2310_v10, %v2310_v10  ;;  %v1254_v29 = vsel %vm435_vm0, %v976_v7, 0.0 }
  0x70   : > { %v531_v63 = vsel %vm435_vm0, %v2500_v39, 0.0 }
  0x71   : > { %v518_v0 = vadd.f32 %v517_v42, %v516_v26  ;;  %v2508_v42 = vld [vmem:[%s2187_s6 + $0x188] sm:$0xff]  ;;  %v1251_v25 = vadd.f32 %v1250_v8, %v1249_v16  ;;  %v978_v26 = vmul.f32 %v2315_v14, %v2315_v14  ;;  %v1256_v1 = vsel %vm435_vm0, %v977_v17, 0.0 }
  0x72   : > { %v533_v5 = vsel %vm435_vm0, %v2508_v42, 0.0 }
  0x73   : > { %v520_v41 = vadd.f32 %v519_v45, %v518_v0  ;;  %v2516_v45 = vld [vmem:[%s2187_s6 + $0x190] sm:$0xff]  ;;  %v1253_v35 = vadd.f32 %v1252_v20, %v1251_v25  ;;  %v979_v0 = vmul.f32 %v2320_v19, %v2320_v19  ;;  %v1258_v6 = vsel %vm435_vm0, %v978_v26, 0.0 }
  0x74   : > { %v535_v10 = vsel %vm435_vm0, %v2516_v45, 0.0 }
  0x75   : > { %v522_v47 = vadd.f32 %v521_v48, %v520_v41  ;;  %v2524_v48 = vld [vmem:[%s2187_s6 + $0x198] sm:$0xff]  ;;  %v1255_v38 = vadd.f32 %v1254_v29, %v1253_v35  ;;  %v980_v41 = vmul.f32 %v2331_v28, %v2331_v28  ;;  %v1260_v49 = vsel %vm435_vm0, %v979_v0, 0.0 }
  0x76   : > { %v537_v14 = vsel %vm435_vm0, %v2524_v48, 0.0 }
  0x77   : > { %v524_v56 = vadd.f32 %v523_v51, %v522_v47  ;;  %v2532_v51 = vld [vmem:[%s2187_s6 + $0x1a0] sm:$0xff]  ;;  %v1257_v44 = vadd.f32 %v1256_v1, %v1255_v38  ;;  %v981_v47 = vmul.f32 %v2338_v34, %v2338_v34  ;;  %v1262_v58 = vsel %vm435_vm0, %v980_v41, 0.0 }
  0x78   : > { %v539_v19 = vsel %vm435_vm0, %v2532_v51, 0.0 }
  0x79   : > { %v526_v3 = vadd.f32 %v525_v54, %v524_v56  ;;  %v2540_v54 = vld [vmem:[%s2187_s6 + $0x1a8] sm:$0xff]  ;;  %v1259_v53 = vadd.f32 %v1258_v6, %v1257_v44  ;;  %v982_v56 = vmul.f32 %v2348_v40, %v2348_v40  ;;  %v1264_v4 = vsel %vm435_vm0, %v981_v47, 0.0 }
  0x7a   : > { %v541_v28 = vsel %vm435_vm0, %v2540_v54, 0.0 }
  0x7b   : > { %v528_v13 = vadd.f32 %v527_v57, %v526_v3  ;;  %v2548_v57 = vld [vmem:[%s2187_s6 + $0x1b0] sm:$0xff]  ;;  %v1261_v61 = vadd.f32 %v1260_v49, %v1259_v53  ;;  %v983_v3 = vmul.f32 %v2356_v46, %v2356_v46  ;;  %v1266_v16 = vsel %vm435_vm0, %v982_v56, 0.0 }
  0x7c   : > { %v543_v34 = vsel %vm435_vm0, %v2548_v57, 0.0 }
  0x7d   : > { %v530_v23 = vadd.f32 %v529_v60, %v528_v13  ;;  %v2556_v60 = vld [vmem:[%s2187_s6 + $0x1b8] sm:$0xff]  ;;  %v1263_v8 = vadd.f32 %v1262_v58, %v1261_v61  ;;  %v984_v13 = vmul.f32 %v2364_v55, %v2364_v55  ;;  %v1268_v25 = vsel %vm435_vm0, %v983_v3, 0.0 }
  0x7e   : > { %v545_v40 = vsel %vm435_vm0, %v2556_v60, 0.0 }
  0x7f   : > { %v532_v32 = vadd.f32 %v531_v63, %v530_v23  ;;  %v2564_v63 = vld [vmem:[%s2187_s6 + $0x1c0] sm:$0xff]  ;;  %v1265_v20 = vadd.f32 %v1264_v4, %v1263_v8  ;;  %v985_v23 = vmul.f32 %v2372_v62, %v2372_v62  ;;  %v1270_v35 = vsel %vm435_vm0, %v984_v13, 0.0 }
  0x80   : > { %v547_v46 = vsel %vm435_vm0, %v2564_v63, 0.0 }
  0x81   : > { %v534_v37 = vadd.f32 %v533_v5, %v532_v32  ;;  %v2572_v5 = vld [vmem:[%s2187_s6 + $0x1c8] sm:$0xff]  ;;  %v1267_v29 = vadd.f32 %v1266_v16, %v1265_v20  ;;  %v986_v32 = vmul.f32 %v2380_v11, %v2380_v11  ;;  %v1272_v38 = vsel %vm435_vm0, %v985_v23, 0.0 }
  0x82   : > { %v549_v55 = vsel %vm435_vm0, %v2572_v5, 0.0 }
  0x83   : > { %v536_v9 = vadd.f32 %v535_v10, %v534_v37  ;;  %v2580_v10 = vld [vmem:[%s2187_s6 + $0x1d0] sm:$0xff]  ;;  %v1269_v1 = vadd.f32 %v1268_v25, %v1267_v29  ;;  %v987_v37 = vmul.f32 %v2388_v22, %v2388_v22  ;;  %v1274_v44 = vsel %vm435_vm0, %v986_v32, 0.0 }
  0x84   : > { %v551_v62 = vsel %vm435_vm0, %v2580_v10, 0.0 }
  0x85   : > { %v538_v52 = vadd.f32 %v537_v14, %v536_v9  ;;  %v2588_v14 = vld [vmem:[%s2187_s6 + $0x1d8] sm:$0xff]  ;;  %v1271_v6 = vadd.f32 %v1270_v35, %v1269_v1  ;;  %v988_v9 = vmul.f32 %v2396_v31, %v2396_v31  ;;  %v1276_v53 = vsel %vm435_vm0, %v987_v37, 0.0 }
  0x86   : > { %v553_v11 = vsel %vm435_vm0, %v2588_v14, 0.0 }
  0x87   : > { %v540_v59 = vadd.f32 %v539_v19, %v538_v52  ;;  %v2596_v19 = vld [vmem:[%s2187_s6 + $0x1e0] sm:$0xff]  ;;  %v1273_v49 = vadd.f32 %v1272_v38, %v1271_v6  ;;  %v989_v52 = vmul.f32 %v2404_v2, %v2404_v2  ;;  %v1278_v61 = vsel %vm435_vm0, %v988_v9, 0.0 }
  0x88   : > { %v555_v22 = vsel %vm435_vm0, %v2596_v19, 0.0 }
  0x89   : > { %v542_v7 = vadd.f32 %v541_v28, %v540_v59  ;;  %v2604_v28 = vld [vmem:[%s2187_s6 + $0x1e8] sm:$0xff]  ;;  %v1275_v58 = vadd.f32 %v1274_v44, %v1273_v49  ;;  %v990_v59 = vmul.f32 %v2412_v43, %v2412_v43  ;;  %v1280_v8 = vsel %vm435_vm0, %v989_v52, 0.0 }
  0x8a   : > { %v557_v31 = vsel %vm435_vm0, %v2604_v28, 0.0 }
  0x8b   : > { %v544_v17 = vadd.f32 %v543_v34, %v542_v7  ;;  %v2612_v34 = vld [vmem:[%s2187_s6 + $0x1f0] sm:$0xff]  ;;  %v1277_v4 = vadd.f32 %v1276_v53, %v1275_v58  ;;  %v991_v7 = vmul.f32 %v2420_v50, %v2420_v50  ;;  %v1282_v20 = vsel %vm435_vm0, %v990_v59, 0.0 }
  0x8c   : > { %v559_v2 = vsel %vm435_vm0, %v2612_v34, 0.0 }
  0x8d   : > { %v546_v26 = vadd.f32 %v545_v40, %v544_v17  ;;  %v2620_v40 = vld [vmem:[%s2187_s6 + $0x1f8] sm:$0xff]  ;;  %v1279_v16 = vadd.f32 %v1278_v61, %v1277_v4  ;;  %v992_v17 = vmul.f32 %v2428_v12, %v2428_v12  ;;  %v1284_v29 = vsel %vm435_vm0, %v991_v7, 0.0 }
  0x8e   : > { %v561_v43 = vsel %vm435_vm0, %v2620_v40, 0.0 }
  0x8f   : > { %v548_v0 = vadd.f32 %v547_v46, %v546_v26  ;;  %v2628_v46 = vld [vmem:[%s2187_s6 + $0x200] sm:$0xff]  ;;  %v1281_v25 = vadd.f32 %v1280_v8, %v1279_v16  ;;  %v993_v26 = vmul.f32 %v2436_v15, %v2436_v15  ;;  %v1286_v1 = vsel %vm435_vm0, %v992_v17, 0.0 }
  0x90   : > { %v563_v50 = vsel %vm435_vm0, %v2628_v46, 0.0 }
  0x91   : > { %v550_v41 = vadd.f32 %v549_v55, %v548_v0  ;;  %v2636_v55 = vld [vmem:[%s2187_s6 + $0x208] sm:$0xff]  ;;  %v1283_v35 = vadd.f32 %v1282_v20, %v1281_v25  ;;  %v994_v0 = vmul.f32 %v2444_v18, %v2444_v18  ;;  %v1288_v6 = vsel %vm435_vm0, %v993_v26, 0.0 }
  0x92   : > { %v565_v12 = vsel %vm435_vm0, %v2636_v55, 0.0 }
  0x93   : > { %v552_v47 = vadd.f32 %v551_v62, %v550_v41  ;;  %v2644_v62 = vld [vmem:[%s2187_s6 + $0x210] sm:$0xff]  ;;  %v1285_v38 = vadd.f32 %v1284_v29, %v1283_v35  ;;  %v995_v41 = vmul.f32 %v2452_v21, %v2452_v21  ;;  %v1290_v49 = vsel %vm435_vm0, %v994_v0, 0.0 }
  0x94   : > { %v567_v15 = vsel %vm435_vm0, %v2644_v62, 0.0 }
  0x95   : > { %v554_v56 = vadd.f32 %v553_v11, %v552_v47  ;;  %v2652_v11 = vld [vmem:[%s2187_s6 + $0x218] sm:$0xff]  ;;  %v1287_v44 = vadd.f32 %v1286_v1, %v1285_v38  ;;  %v996_v47 = vmul.f32 %v2460_v24, %v2460_v24  ;;  %v1292_v58 = vsel %vm435_vm0, %v995_v41, 0.0 }
  0x96   : > { %v569_v18 = vsel %vm435_vm0, %v2652_v11, 0.0 }
  0x97   : > { %v556_v3 = vadd.f32 %v555_v22, %v554_v56  ;;  %v2660_v22 = vld [vmem:[%s2187_s6 + $0x220] sm:$0xff]  ;;  %v1289_v53 = vadd.f32 %v1288_v6, %v1287_v44  ;;  %v997_v56 = vmul.f32 %v2468_v27, %v2468_v27  ;;  %v1294_v4 = vsel %vm435_vm0, %v996_v47, 0.0 }
  0x98   : > { %v571_v21 = vsel %vm435_vm0, %v2660_v22, 0.0 }
  0x99   : > { %v558_v13 = vadd.f32 %v557_v31, %v556_v3  ;;  %v2668_v31 = vld [vmem:[%s2187_s6 + $0x228] sm:$0xff]  ;;  %v1291_v61 = vadd.f32 %v1290_v49, %v1289_v53  ;;  %v998_v3 = vmul.f32 %v2476_v30, %v2476_v30  ;;  %v1296_v16 = vsel %vm435_vm0, %v997_v56, 0.0 }
  0x9a   : > { %v573_v24 = vsel %vm435_vm0, %v2668_v31, 0.0 }
  0x9b   : > { %v560_v23 = vadd.f32 %v559_v2, %v558_v13  ;;  %v2676_v2 = vld [vmem:[%s2187_s6 + $0x230] sm:$0xff]  ;;  %v1293_v8 = vadd.f32 %v1292_v58, %v1291_v61  ;;  %v999_v13 = vmul.f32 %v2484_v33, %v2484_v33  ;;  %v1298_v25 = vsel %vm435_vm0, %v998_v3, 0.0 }
  0x9c   : > { %v575_v27 = vsel %vm435_vm0, %v2676_v2, 0.0 }
  0x9d   : > { %v562_v32 = vadd.f32 %v561_v43, %v560_v23  ;;  %v2684_v43 = vld [vmem:[%s2187_s6 + $0x238] sm:$0xff]  ;;  %v1295_v20 = vadd.f32 %v1294_v4, %v1293_v8  ;;  %v1000_v23 = vmul.f32 %v2492_v36, %v2492_v36  ;;  %v1300_v35 = vsel %vm435_vm0, %v999_v13, 0.0 }
  0x9e   : > { %v577_v30 = vsel %vm435_vm0, %v2684_v43, 0.0 }
  0x9f   : > { %v564_v37 = vadd.f32 %v563_v50, %v562_v32  ;;  %v2692_v50 = vld [vmem:[%s2187_s6 + $0x240] sm:$0xff]  ;;  %v1297_v29 = vadd.f32 %v1296_v16, %v1295_v20  ;;  %v1001_v32 = vmul.f32 %v2500_v39, %v2500_v39  ;;  %v1302_v38 = vsel %vm435_vm0, %v1000_v23, 0.0 }
  0xa0   : > { %v579_v33 = vsel %vm435_vm0, %v2692_v50, 0.0 }
  0xa1   : > { %v566_v9 = vadd.f32 %v565_v12, %v564_v37  ;;  %v2700_v12 = vld [vmem:[%s2187_s6 + $0x248] sm:$0xff]  ;;  %v1299_v1 = vadd.f32 %v1298_v25, %v1297_v29  ;;  %v1002_v37 = vmul.f32 %v2508_v42, %v2508_v42  ;;  %v1304_v44 = vsel %vm435_vm0, %v1001_v32, 0.0 }
  0xa2   : > { %v581_v36 = vsel %vm435_vm0, %v2700_v12, 0.0 }
  0xa3   : > { %v568_v52 = vadd.f32 %v567_v15, %v566_v9  ;;  %v2708_v15 = vld [vmem:[%s2187_s6 + $0x250] sm:$0xff]  ;;  %v1301_v6 = vadd.f32 %v1300_v35, %v1299_v1  ;;  %v1003_v9 = vmul.f32 %v2516_v45, %v2516_v45  ;;  %v1306_v53 = vsel %vm435_vm0, %v1002_v37, 0.0 }
  0xa4   : > { %v583_v39 = vsel %vm435_vm0, %v2708_v15, 0.0 }
  0xa5   : > { %v570_v59 = vadd.f32 %v569_v18, %v568_v52  ;;  %v2716_v18 = vld [vmem:[%s2187_s6 + $0x258] sm:$0xff]  ;;  %v1303_v49 = vadd.f32 %v1302_v38, %v1301_v6  ;;  %v1004_v52 = vmul.f32 %v2524_v48, %v2524_v48  ;;  %v1308_v61 = vsel %vm435_vm0, %v1003_v9, 0.0 }
  0xa6   : > { %v585_v42 = vsel %vm435_vm0, %v2716_v18, 0.0 }
  0xa7   : > { %v572_v7 = vadd.f32 %v571_v21, %v570_v59  ;;  %v2724_v21 = vld [vmem:[%s2187_s6 + $0x260] sm:$0xff]  ;;  %v1305_v58 = vadd.f32 %v1304_v44, %v1303_v49  ;;  %v1005_v59 = vmul.f32 %v2532_v51, %v2532_v51  ;;  %v1310_v8 = vsel %vm435_vm0, %v1004_v52, 0.0 }
  0xa8   : > { %v587_v45 = vsel %vm435_vm0, %v2724_v21, 0.0 }
  0xa9   : > { %v574_v17 = vadd.f32 %v573_v24, %v572_v7  ;;  %v2732_v24 = vld [vmem:[%s2187_s6 + $0x268] sm:$0xff]  ;;  %v1307_v4 = vadd.f32 %v1306_v53, %v1305_v58  ;;  %v1006_v7 = vmul.f32 %v2540_v54, %v2540_v54  ;;  %v1312_v20 = vsel %vm435_vm0, %v1005_v59, 0.0 }
  0xaa   : > { %v589_v48 = vsel %vm435_vm0, %v2732_v24, 0.0 }
  0xab   : > { %v576_v26 = vadd.f32 %v575_v27, %v574_v17  ;;  %v2740_v27 = vld [vmem:[%s2187_s6 + $0x270] sm:$0xff]  ;;  %v1309_v16 = vadd.f32 %v1308_v61, %v1307_v4  ;;  %v1007_v17 = vmul.f32 %v2548_v57, %v2548_v57  ;;  %v1314_v29 = vsel %vm435_vm0, %v1006_v7, 0.0 }
  0xac   : > { %v591_v51 = vsel %vm435_vm0, %v2740_v27, 0.0 }
  0xad   : > { %v578_v0 = vadd.f32 %v577_v30, %v576_v26  ;;  %v2748_v30 = vld [vmem:[%s2187_s6 + $0x278] sm:$0xff]  ;;  %v1311_v25 = vadd.f32 %v1310_v8, %v1309_v16  ;;  %v1008_v26 = vmul.f32 %v2556_v60, %v2556_v60  ;;  %v1316_v1 = vsel %vm435_vm0, %v1007_v17, 0.0 }
  0xae   : > { %v593_v54 = vsel %vm435_vm0, %v2748_v30, 0.0 }
  0xaf   : > { %v580_v41 = vadd.f32 %v579_v33, %v578_v0  ;;  %v2756_v33 = vld [vmem:[%s2187_s6 + $0x280] sm:$0xff]  ;;  %v1313_v35 = vadd.f32 %v1312_v20, %v1311_v25  ;;  %v1009_v0 = vmul.f32 %v2564_v63, %v2564_v63  ;;  %v1318_v6 = vsel %vm435_vm0, %v1008_v26, 0.0 }
  0xb0   : > { %v595_v57 = vsel %vm435_vm0, %v2756_v33, 0.0 }
  0xb1   : > { %v582_v47 = vadd.f32 %v581_v36, %v580_v41  ;;  %v2764_v36 = vld [vmem:[%s2187_s6 + $0x288] sm:$0xff]  ;;  %v1315_v38 = vadd.f32 %v1314_v29, %v1313_v35  ;;  %v1010_v41 = vmul.f32 %v2572_v5, %v2572_v5  ;;  %v1320_v49 = vsel %vm435_vm0, %v1009_v0, 0.0 }
  0xb2   : > { %v597_v60 = vsel %vm435_vm0, %v2764_v36, 0.0 }
  0xb3   : > { %v584_v56 = vadd.f32 %v583_v39, %v582_v47  ;;  %v2772_v39 = vld [vmem:[%s2187_s6 + $0x290] sm:$0xff]  ;;  %v1317_v44 = vadd.f32 %v1316_v1, %v1315_v38  ;;  %v1011_v47 = vmul.f32 %v2580_v10, %v2580_v10  ;;  %v1322_v58 = vsel %vm435_vm0, %v1010_v41, 0.0 }
  0xb4   : > { %v599_v63 = vsel %vm435_vm0, %v2772_v39, 0.0 }
  0xb5   : > { %v586_v3 = vadd.f32 %v585_v42, %v584_v56  ;;  %v2780_v42 = vld [vmem:[%s2187_s6 + $0x298] sm:$0xff]  ;;  %v1319_v53 = vadd.f32 %v1318_v6, %v1317_v44  ;;  %v1012_v56 = vmul.f32 %v2588_v14, %v2588_v14  ;;  %v1324_v4 = vsel %vm435_vm0, %v1011_v47, 0.0 }
  0xb6   : > { %v601_v5 = vsel %vm435_vm0, %v2780_v42, 0.0 }
  0xb7   : > { %v588_v13 = vadd.f32 %v587_v45, %v586_v3  ;;  %v2788_v45 = vld [vmem:[%s2187_s6 + $0x2a0] sm:$0xff]  ;;  %v1321_v61 = vadd.f32 %v1320_v49, %v1319_v53  ;;  %v1013_v3 = vmul.f32 %v2596_v19, %v2596_v19  ;;  %v1326_v16 = vsel %vm435_vm0, %v1012_v56, 0.0 }
  0xb8   : > { %v603_v10 = vsel %vm435_vm0, %v2788_v45, 0.0 }
  0xb9   : > { %v590_v23 = vadd.f32 %v589_v48, %v588_v13  ;;  %v2796_v48 = vld [vmem:[%s2187_s6 + $0x2a8] sm:$0xff]  ;;  %v1323_v8 = vadd.f32 %v1322_v58, %v1321_v61  ;;  %v1014_v13 = vmul.f32 %v2604_v28, %v2604_v28  ;;  %v1328_v25 = vsel %vm435_vm0, %v1013_v3, 0.0 }
  0xba   : > { %v605_v14 = vsel %vm435_vm0, %v2796_v48, 0.0 }
  0xbb   : > { %v592_v32 = vadd.f32 %v591_v51, %v590_v23  ;;  %v2804_v51 = vld [vmem:[%s2187_s6 + $0x2b0] sm:$0xff]  ;;  %v1325_v20 = vadd.f32 %v1324_v4, %v1323_v8  ;;  %v1015_v23 = vmul.f32 %v2612_v34, %v2612_v34  ;;  %v1330_v35 = vsel %vm435_vm0, %v1014_v13, 0.0 }
  0xbc   : > { %v607_v19 = vsel %vm435_vm0, %v2804_v51, 0.0 }
  0xbd   : > { %v594_v37 = vadd.f32 %v593_v54, %v592_v32  ;;  %v2812_v54 = vld [vmem:[%s2187_s6 + $0x2b8] sm:$0xff]  ;;  %v1327_v29 = vadd.f32 %v1326_v16, %v1325_v20  ;;  %v1016_v32 = vmul.f32 %v2620_v40, %v2620_v40  ;;  %v1332_v38 = vsel %vm435_vm0, %v1015_v23, 0.0 }
  0xbe   : > { %v609_v28 = vsel %vm435_vm0, %v2812_v54, 0.0 }
  0xbf   : > { %v596_v9 = vadd.f32 %v595_v57, %v594_v37  ;;  %v2820_v57 = vld [vmem:[%s2187_s6 + $0x2c0] sm:$0xff]  ;;  %v1329_v1 = vadd.f32 %v1328_v25, %v1327_v29  ;;  %v1017_v37 = vmul.f32 %v2628_v46, %v2628_v46  ;;  %v1334_v44 = vsel %vm435_vm0, %v1016_v32, 0.0 }
  0xc0   : > { %v611_v34 = vsel %vm435_vm0, %v2820_v57, 0.0 }
  0xc1   : > { %v598_v52 = vadd.f32 %v597_v60, %v596_v9  ;;  %v2828_v60 = vld [vmem:[%s2187_s6 + $0x2c8] sm:$0xff]  ;;  %v1331_v6 = vadd.f32 %v1330_v35, %v1329_v1  ;;  %v1018_v9 = vmul.f32 %v2636_v55, %v2636_v55  ;;  %v1336_v53 = vsel %vm435_vm0, %v1017_v37, 0.0 }
  0xc2   : > { %v613_v40 = vsel %vm435_vm0, %v2828_v60, 0.0 }
  0xc3   : > { %v600_v59 = vadd.f32 %v599_v63, %v598_v52  ;;  %v2836_v63 = vld [vmem:[%s2187_s6 + $0x2d0] sm:$0xff]  ;;  %v1333_v49 = vadd.f32 %v1332_v38, %v1331_v6  ;;  %v1019_v52 = vmul.f32 %v2644_v62, %v2644_v62  ;;  %v1338_v61 = vsel %vm435_vm0, %v1018_v9, 0.0 }
  0xc4   : > { %v615_v46 = vsel %vm435_vm0, %v2836_v63, 0.0 }
  0xc5   : > { %v602_v7 = vadd.f32 %v601_v5, %v600_v59  ;;  %v2844_v5 = vld [vmem:[%s2187_s6 + $0x2d8] sm:$0xff]  ;;  %v1335_v58 = vadd.f32 %v1334_v44, %v1333_v49  ;;  %v1020_v59 = vmul.f32 %v2652_v11, %v2652_v11  ;;  %v1340_v8 = vsel %vm435_vm0, %v1019_v52, 0.0 }
  0xc6   : > { %v617_v55 = vsel %vm435_vm0, %v2844_v5, 0.0 }
  0xc7   : > { %v604_v17 = vadd.f32 %v603_v10, %v602_v7  ;;  %v2852_v10 = vld [vmem:[%s2187_s6 + $0x2e0] sm:$0xff]  ;;  %v1337_v4 = vadd.f32 %v1336_v53, %v1335_v58  ;;  %v1021_v7 = vmul.f32 %v2660_v22, %v2660_v22  ;;  %v1342_v20 = vsel %vm435_vm0, %v1020_v59, 0.0 }
  0xc8   : > { %v619_v62 = vsel %vm435_vm0, %v2852_v10, 0.0 }
  0xc9   : > { %v606_v26 = vadd.f32 %v605_v14, %v604_v17  ;;  %v2860_v14 = vld [vmem:[%s2187_s6 + $0x2e8] sm:$0xff]  ;;  %v1339_v16 = vadd.f32 %v1338_v61, %v1337_v4  ;;  %v1022_v17 = vmul.f32 %v2668_v31, %v2668_v31  ;;  %v1344_v29 = vsel %vm435_vm0, %v1021_v7, 0.0 }
  0xca   : > { %v621_v11 = vsel %vm435_vm0, %v2860_v14, 0.0 }
  0xcb   : > { %v608_v0 = vadd.f32 %v607_v19, %v606_v26  ;;  %v2868_v19 = vld [vmem:[%s2187_s6 + $0x2f0] sm:$0xff]  ;;  %v1341_v25 = vadd.f32 %v1340_v8, %v1339_v16  ;;  %v1023_v26 = vmul.f32 %v2676_v2, %v2676_v2  ;;  %v1346_v1 = vsel %vm435_vm0, %v1022_v17, 0.0 }
  0xcc   : > { %v623_v22 = vsel %vm435_vm0, %v2868_v19, 0.0 }
  0xcd   : > { %v610_v41 = vadd.f32 %v609_v28, %v608_v0  ;;  %v2876_v28 = vld [vmem:[%s2187_s6 + $0x2f8] sm:$0xff]  ;;  %v1343_v35 = vadd.f32 %v1342_v20, %v1341_v25  ;;  %v1024_v0 = vmul.f32 %v2684_v43, %v2684_v43  ;;  %v1348_v6 = vsel %vm435_vm0, %v1023_v26, 0.0 }
  0xce   : > { %v625_v31 = vsel %vm435_vm0, %v2876_v28, 0.0 }
  0xcf   : > { %v612_v47 = vadd.f32 %v611_v34, %v610_v41  ;;  %v2884_v34 = vld [vmem:[%s2187_s6 + $0x300] sm:$0xff]  ;;  %v1345_v38 = vadd.f32 %v1344_v29, %v1343_v35  ;;  %v1025_v41 = vmul.f32 %v2692_v50, %v2692_v50  ;;  %v1350_v49 = vsel %vm435_vm0, %v1024_v0, 0.0 }
  0xd0   : > { %v627_v2 = vsel %vm435_vm0, %v2884_v34, 0.0 }
  0xd1   : > { %v614_v56 = vadd.f32 %v613_v40, %v612_v47  ;;  %v2892_v40 = vld [vmem:[%s2187_s6 + $0x308] sm:$0xff]  ;;  %v1347_v44 = vadd.f32 %v1346_v1, %v1345_v38  ;;  %v1026_v47 = vmul.f32 %v2700_v12, %v2700_v12  ;;  %v1352_v58 = vsel %vm435_vm0, %v1025_v41, 0.0 }
  0xd2   : > { %v629_v43 = vsel %vm435_vm0, %v2892_v40, 0.0 }
  0xd3   : > { %v616_v3 = vadd.f32 %v615_v46, %v614_v56  ;;  %v2900_v46 = vld [vmem:[%s2187_s6 + $0x310] sm:$0xff]  ;;  %v1349_v53 = vadd.f32 %v1348_v6, %v1347_v44  ;;  %v1027_v56 = vmul.f32 %v2708_v15, %v2708_v15  ;;  %v1354_v4 = vsel %vm435_vm0, %v1026_v47, 0.0 }
  0xd4   : > { %v631_v50 = vsel %vm435_vm0, %v2900_v46, 0.0 }
  0xd5   : > { %v618_v13 = vadd.f32 %v617_v55, %v616_v3  ;;  %v2908_v55 = vld [vmem:[%s2187_s6 + $0x318] sm:$0xff]  ;;  %v1351_v61 = vadd.f32 %v1350_v49, %v1349_v53  ;;  %v1028_v3 = vmul.f32 %v2716_v18, %v2716_v18  ;;  %v1356_v16 = vsel %vm435_vm0, %v1027_v56, 0.0 }
  0xd6   : > { %v633_v12 = vsel %vm435_vm0, %v2908_v55, 0.0 }
  0xd7   : > { %v620_v23 = vadd.f32 %v619_v62, %v618_v13  ;;  %v2916_v62 = vld [vmem:[%s2187_s6 + $0x320] sm:$0xff]  ;;  %v1353_v8 = vadd.f32 %v1352_v58, %v1351_v61  ;;  %v1029_v13 = vmul.f32 %v2724_v21, %v2724_v21  ;;  %v1358_v25 = vsel %vm435_vm0, %v1028_v3, 0.0 }
  0xd8   : > { %v635_v15 = vsel %vm435_vm0, %v2916_v62, 0.0 }
  0xd9   : > { %v622_v32 = vadd.f32 %v621_v11, %v620_v23  ;;  %v2924_v11 = vld [vmem:[%s2187_s6 + $0x328] sm:$0xff]  ;;  %v1355_v20 = vadd.f32 %v1354_v4, %v1353_v8  ;;  %v1030_v23 = vmul.f32 %v2732_v24, %v2732_v24  ;;  %v1360_v35 = vsel %vm435_vm0, %v1029_v13, 0.0 }
  0xda   : > { %v637_v18 = vsel %vm435_vm0, %v2924_v11, 0.0 }
  0xdb   : > { %v624_v37 = vadd.f32 %v623_v22, %v622_v32  ;;  %v2932_v22 = vld [vmem:[%s2187_s6 + $0x330] sm:$0xff]  ;;  %v1357_v29 = vadd.f32 %v1356_v16, %v1355_v20  ;;  %v1031_v32 = vmul.f32 %v2740_v27, %v2740_v27  ;;  %v1362_v38 = vsel %vm435_vm0, %v1030_v23, 0.0 }
  0xdc   : > { %v639_v21 = vsel %vm435_vm0, %v2932_v22, 0.0 }
  0xdd   : > { %v626_v9 = vadd.f32 %v625_v31, %v624_v37  ;;  %v2940_v31 = vld [vmem:[%s2187_s6 + $0x338] sm:$0xff]  ;;  %v1359_v1 = vadd.f32 %v1358_v25, %v1357_v29  ;;  %v1032_v37 = vmul.f32 %v2748_v30, %v2748_v30  ;;  %v1364_v44 = vsel %vm435_vm0, %v1031_v32, 0.0 }
  0xde   : > { %v641_v24 = vsel %vm435_vm0, %v2940_v31, 0.0 }
  0xdf   : > { %v628_v52 = vadd.f32 %v627_v2, %v626_v9  ;;  %v2948_v2 = vld [vmem:[%s2187_s6 + $0x340] sm:$0xff]  ;;  %v1361_v6 = vadd.f32 %v1360_v35, %v1359_v1  ;;  %v1033_v9 = vmul.f32 %v2756_v33, %v2756_v33  ;;  %v1366_v53 = vsel %vm435_vm0, %v1032_v37, 0.0 }
  0xe0   : > { %v643_v27 = vsel %vm435_vm0, %v2948_v2, 0.0 }
  0xe1   : > { %v630_v59 = vadd.f32 %v629_v43, %v628_v52  ;;  %v2956_v43 = vld [vmem:[%s2187_s6 + $0x348] sm:$0xff]  ;;  %v1363_v49 = vadd.f32 %v1362_v38, %v1361_v6  ;;  %v1034_v52 = vmul.f32 %v2764_v36, %v2764_v36  ;;  %v1368_v61 = vsel %vm435_vm0, %v1033_v9, 0.0 }
  0xe2   : > { %v645_v30 = vsel %vm435_vm0, %v2956_v43, 0.0 }
  0xe3   : > { %v632_v7 = vadd.f32 %v631_v50, %v630_v59  ;;  %v2964_v50 = vld [vmem:[%s2187_s6 + $0x350] sm:$0xff]  ;;  %v1365_v58 = vadd.f32 %v1364_v44, %v1363_v49  ;;  %v1035_v59 = vmul.f32 %v2772_v39, %v2772_v39  ;;  %v1370_v8 = vsel %vm435_vm0, %v1034_v52, 0.0 }
  0xe4   : > { %v647_v33 = vsel %vm435_vm0, %v2964_v50, 0.0 }
  0xe5   : > { %v634_v17 = vadd.f32 %v633_v12, %v632_v7  ;;  %v2972_v12 = vld [vmem:[%s2187_s6 + $0x358] sm:$0xff]  ;;  %v1367_v4 = vadd.f32 %v1366_v53, %v1365_v58  ;;  %v1036_v7 = vmul.f32 %v2780_v42, %v2780_v42  ;;  %v1372_v20 = vsel %vm435_vm0, %v1035_v59, 0.0 }
  0xe6   : > { %v649_v36 = vsel %vm435_vm0, %v2972_v12, 0.0 }
  0xe7   : > { %v636_v26 = vadd.f32 %v635_v15, %v634_v17  ;;  %v2980_v15 = vld [vmem:[%s2187_s6 + $0x360] sm:$0xff]  ;;  %v1369_v16 = vadd.f32 %v1368_v61, %v1367_v4  ;;  %v1037_v17 = vmul.f32 %v2788_v45, %v2788_v45  ;;  %v1374_v29 = vsel %vm435_vm0, %v1036_v7, 0.0 }
  0xe8   : > { %v651_v39 = vsel %vm435_vm0, %v2980_v15, 0.0 }
  0xe9   : > { %v638_v0 = vadd.f32 %v637_v18, %v636_v26  ;;  %v2988_v18 = vld [vmem:[%s2187_s6 + $0x368] sm:$0xff]  ;;  %v1371_v25 = vadd.f32 %v1370_v8, %v1369_v16  ;;  %v1038_v26 = vmul.f32 %v2796_v48, %v2796_v48  ;;  %v1376_v1 = vsel %vm435_vm0, %v1037_v17, 0.0 }
  0xea   : > { %v653_v42 = vsel %vm435_vm0, %v2988_v18, 0.0 }
  0xeb   : > { %v640_v41 = vadd.f32 %v639_v21, %v638_v0  ;;  %v2996_v21 = vld [vmem:[%s2187_s6 + $0x370] sm:$0xff]  ;;  %v1373_v35 = vadd.f32 %v1372_v20, %v1371_v25  ;;  %v1039_v0 = vmul.f32 %v2804_v51, %v2804_v51  ;;  %v1378_v6 = vsel %vm435_vm0, %v1038_v26, 0.0 }
  0xec   : > { %v655_v45 = vsel %vm435_vm0, %v2996_v21, 0.0 }
  0xed   : > { %v642_v47 = vadd.f32 %v641_v24, %v640_v41  ;;  %v3004_v24 = vld [vmem:[%s2187_s6 + $0x378] sm:$0xff]  ;;  %v1375_v38 = vadd.f32 %v1374_v29, %v1373_v35  ;;  %v1040_v41 = vmul.f32 %v2812_v54, %v2812_v54  ;;  %v1380_v49 = vsel %vm435_vm0, %v1039_v0, 0.0 }
  0xee   : > { %v657_v48 = vsel %vm435_vm0, %v3004_v24, 0.0 }
  0xef   : > { %v644_v56 = vadd.f32 %v643_v27, %v642_v47  ;;  %v3012_v27 = vld [vmem:[%s2187_s6 + $0x380] sm:$0xff]  ;;  %v1377_v44 = vadd.f32 %v1376_v1, %v1375_v38  ;;  %v1041_v47 = vmul.f32 %v2820_v57, %v2820_v57  ;;  %v1382_v58 = vsel %vm435_vm0, %v1040_v41, 0.0 }
  0xf0   : > { %v659_v51 = vsel %vm435_vm0, %v3012_v27, 0.0 }
  0xf1   : > { %v646_v3 = vadd.f32 %v645_v30, %v644_v56  ;;  %v3020_v30 = vld [vmem:[%s2187_s6 + $0x388] sm:$0xff]  ;;  %v1379_v53 = vadd.f32 %v1378_v6, %v1377_v44  ;;  %v1042_v56 = vmul.f32 %v2828_v60, %v2828_v60  ;;  %v1384_v4 = vsel %vm435_vm0, %v1041_v47, 0.0 }
  0xf2   : > { %v661_v54 = vsel %vm435_vm0, %v3020_v30, 0.0 }
  0xf3   : > { %v648_v13 = vadd.f32 %v647_v33, %v646_v3  ;;  %v3028_v33 = vld [vmem:[%s2187_s6 + $0x390] sm:$0xff]  ;;  %v1381_v61 = vadd.f32 %v1380_v49, %v1379_v53  ;;  %v1043_v3 = vmul.f32 %v2836_v63, %v2836_v63  ;;  %v1386_v16 = vsel %vm435_vm0, %v1042_v56, 0.0 }
  0xf4   : > { %v663_v57 = vsel %vm435_vm0, %v3028_v33, 0.0 }
  0xf5   : > { %v650_v23 = vadd.f32 %v649_v36, %v648_v13  ;;  %v3036_v36 = vld [vmem:[%s2187_s6 + $0x398] sm:$0xff]  ;;  %v1383_v8 = vadd.f32 %v1382_v58, %v1381_v61  ;;  %v1044_v13 = vmul.f32 %v2844_v5, %v2844_v5  ;;  %v1388_v25 = vsel %vm435_vm0, %v1043_v3, 0.0 }
  0xf6   : > { %v665_v60 = vsel %vm435_vm0, %v3036_v36, 0.0 }
  0xf7   : > { %v652_v32 = vadd.f32 %v651_v39, %v650_v23  ;;  %v3044_v39 = vld [vmem:[%s2187_s6 + $0x3a0] sm:$0xff]  ;;  %v1385_v20 = vadd.f32 %v1384_v4, %v1383_v8  ;;  %v1045_v23 = vmul.f32 %v2852_v10, %v2852_v10  ;;  %v1390_v35 = vsel %vm435_vm0, %v1044_v13, 0.0 }
  0xf8   : > { %v667_v63 = vsel %vm435_vm0, %v3044_v39, 0.0 }
  0xf9   : > { %v654_v37 = vadd.f32 %v653_v42, %v652_v32  ;;  %v3052_v42 = vld [vmem:[%s2187_s6 + $0x3a8] sm:$0xff]  ;;  %v1387_v29 = vadd.f32 %v1386_v16, %v1385_v20  ;;  %v1046_v32 = vmul.f32 %v2860_v14, %v2860_v14  ;;  %v1392_v38 = vsel %vm435_vm0, %v1045_v23, 0.0 }
  0xfa   : > { %v669_v5 = vsel %vm435_vm0, %v3052_v42, 0.0 }
  0xfb   : > { %v656_v9 = vadd.f32 %v655_v45, %v654_v37  ;;  %v3060_v45 = vld [vmem:[%s2187_s6 + $0x3b0] sm:$0xff]  ;;  %v1389_v1 = vadd.f32 %v1388_v25, %v1387_v29  ;;  %v1047_v37 = vmul.f32 %v2868_v19, %v2868_v19  ;;  %v1394_v44 = vsel %vm435_vm0, %v1046_v32, 0.0 }
  0xfc   : > { %v671_v10 = vsel %vm435_vm0, %v3060_v45, 0.0 }
  0xfd   : > { %v658_v52 = vadd.f32 %v657_v48, %v656_v9  ;;  %v3068_v48 = vld [vmem:[%s2187_s6 + $0x3b8] sm:$0xff]  ;;  %v1391_v6 = vadd.f32 %v1390_v35, %v1389_v1  ;;  %v1048_v9 = vmul.f32 %v2876_v28, %v2876_v28  ;;  %v1396_v53 = vsel %vm435_vm0, %v1047_v37, 0.0 }
  0xfe   : > { %v673_v14 = vsel %vm435_vm0, %v3068_v48, 0.0 }
  0xff   : > { %v660_v59 = vadd.f32 %v659_v51, %v658_v52  ;;  %v3076_v51 = vld [vmem:[%s2187_s6 + $0x3c0] sm:$0xff]  ;;  %v1393_v49 = vadd.f32 %v1392_v38, %v1391_v6  ;;  %v1049_v52 = vmul.f32 %v2884_v34, %v2884_v34  ;;  %v1398_v61 = vsel %vm435_vm0, %v1048_v9, 0.0 }
 0x100   : > { %v675_v19 = vsel %vm435_vm0, %v3076_v51, 0.0 }
 0x101   : > { %v662_v7 = vadd.f32 %v661_v54, %v660_v59  ;;  %v3084_v54 = vld [vmem:[%s2187_s6 + $0x3c8] sm:$0xff]  ;;  %v1395_v58 = vadd.f32 %v1394_v44, %v1393_v49  ;;  %v1050_v59 = vmul.f32 %v2892_v40, %v2892_v40  ;;  %v1400_v8 = vsel %vm435_vm0, %v1049_v52, 0.0 }
 0x102   : > { %v677_v28 = vsel %vm435_vm0, %v3084_v54, 0.0 }
 0x103   : > { %v664_v17 = vadd.f32 %v663_v57, %v662_v7  ;;  %v3092_v57 = vld [vmem:[%s2187_s6 + $0x3d0] sm:$0xff]  ;;  %v1397_v4 = vadd.f32 %v1396_v53, %v1395_v58  ;;  %v1051_v7 = vmul.f32 %v2900_v46, %v2900_v46  ;;  %v1402_v20 = vsel %vm435_vm0, %v1050_v59, 0.0 }
 0x104   : > { %v679_v34 = vsel %vm435_vm0, %v3092_v57, 0.0 }
 0x105   : > { %v666_v26 = vadd.f32 %v665_v60, %v664_v17  ;;  %v3100_v60 = vld [vmem:[%s2187_s6 + $0x3d8] sm:$0xff]  ;;  %v1399_v16 = vadd.f32 %v1398_v61, %v1397_v4  ;;  %v1052_v17 = vmul.f32 %v2908_v55, %v2908_v55  ;;  %v1404_v29 = vsel %vm435_vm0, %v1051_v7, 0.0 }
 0x106   : > { %v681_v40 = vsel %vm435_vm0, %v3100_v60, 0.0 }
 0x107   : > { %v668_v0 = vadd.f32 %v667_v63, %v666_v26  ;;  %v3108_v63 = vld [vmem:[%s2187_s6 + $0x3e0] sm:$0xff]  ;;  %v1401_v25 = vadd.f32 %v1400_v8, %v1399_v16  ;;  %v1053_v26 = vmul.f32 %v2916_v62, %v2916_v62  ;;  %v1406_v1 = vsel %vm435_vm0, %v1052_v17, 0.0 }
 0x108   : > { %v683_v46 = vsel %vm435_vm0, %v3108_v63, 0.0 }
 0x109   : > { %v670_v41 = vadd.f32 %v669_v5, %v668_v0  ;;  %v3116_v5 = vld [vmem:[%s2187_s6 + $0x3e8] sm:$0xff]  ;;  %v1403_v35 = vadd.f32 %v1402_v20, %v1401_v25  ;;  %v1054_v0 = vmul.f32 %v2924_v11, %v2924_v11  ;;  %v1408_v6 = vsel %vm435_vm0, %v1053_v26, 0.0 }
 0x10a   : > { %v685_v55 = vsel %vm435_vm0, %v3116_v5, 0.0 }
 0x10b   : > { %v672_v47 = vadd.f32 %v671_v10, %v670_v41  ;;  %v3124_v10 = vld [vmem:[%s2187_s6 + $0x3f0] sm:$0xff]  ;;  %v1405_v38 = vadd.f32 %v1404_v29, %v1403_v35  ;;  %v1055_v41 = vmul.f32 %v2932_v22, %v2932_v22  ;;  %v1410_v49 = vsel %vm435_vm0, %v1054_v0, 0.0 }
 0x10c   : > { %v687_v62 = vsel %vm435_vm0, %v3124_v10, 0.0 }
 0x10d   : > { %v674_v56 = vadd.f32 %v673_v14, %v672_v47  ;;  %v3132_v14 = vld [vmem:[%s2187_s6 + $0x3f8] sm:$0xff]  ;;  %v1407_v44 = vadd.f32 %v1406_v1, %v1405_v38  ;;  %v1056_v47 = vmul.f32 %v2940_v31, %v2940_v31  ;;  %v1412_v58 = vsel %vm435_vm0, %v1055_v41, 0.0 }
 0x10e   : > { %v689_v11 = vsel %vm435_vm0, %v3132_v14, 0.0 }
 0x10f   : > { %v676_v3 = vadd.f32 %v675_v19, %v674_v56  ;;  %v3140_v19 = vld [vmem:[%s2187_s6 + $0x400] sm:$0xff]  ;;  %v1409_v53 = vadd.f32 %v1408_v6, %v1407_v44  ;;  %v1057_v56 = vmul.f32 %v2948_v2, %v2948_v2  ;;  %v1414_v4 = vsel %vm435_vm0, %v1056_v47, 0.0 }
 0x110   : > { %v691_v22 = vsel %vm435_vm0, %v3140_v19, 0.0 }
 0x111   : > { %v678_v13 = vadd.f32 %v677_v28, %v676_v3  ;;  %v3148_v28 = vld [vmem:[%s2187_s6 + $0x408] sm:$0xff]  ;;  %v1411_v61 = vadd.f32 %v1410_v49, %v1409_v53  ;;  %v1058_v3 = vmul.f32 %v2956_v43, %v2956_v43  ;;  %v1416_v16 = vsel %vm435_vm0, %v1057_v56, 0.0 }
 0x112   : > { %v693_v31 = vsel %vm435_vm0, %v3148_v28, 0.0 }
 0x113   : > { %v680_v23 = vadd.f32 %v679_v34, %v678_v13  ;;  %v3156_v34 = vld [vmem:[%s2187_s6 + $0x410] sm:$0xff]  ;;  %v1413_v8 = vadd.f32 %v1412_v58, %v1411_v61  ;;  %v1059_v13 = vmul.f32 %v2964_v50, %v2964_v50  ;;  %v1418_v25 = vsel %vm435_vm0, %v1058_v3, 0.0 }
 0x114   : > { %v695_v2 = vsel %vm435_vm0, %v3156_v34, 0.0 }
 0x115   : > { %v682_v32 = vadd.f32 %v681_v40, %v680_v23  ;;  %v3164_v40 = vld [vmem:[%s2187_s6 + $0x418] sm:$0xff]  ;;  %v1415_v20 = vadd.f32 %v1414_v4, %v1413_v8  ;;  %v1060_v23 = vmul.f32 %v2972_v12, %v2972_v12  ;;  %v1420_v35 = vsel %vm435_vm0, %v1059_v13, 0.0 }
 0x116   : > { %v697_v43 = vsel %vm435_vm0, %v3164_v40, 0.0 }
 0x117   : > { %v684_v37 = vadd.f32 %v683_v46, %v682_v32  ;;  %v3172_v46 = vld [vmem:[%s2187_s6 + $0x420] sm:$0xff]  ;;  %v1417_v29 = vadd.f32 %v1416_v16, %v1415_v20  ;;  %v1061_v32 = vmul.f32 %v2980_v15, %v2980_v15  ;;  %v1422_v38 = vsel %vm435_vm0, %v1060_v23, 0.0 }
 0x118   : > { %v699_v50 = vsel %vm435_vm0, %v3172_v46, 0.0 }
 0x119   : > { %v686_v9 = vadd.f32 %v685_v55, %v684_v37  ;;  %v3180_v55 = vld [vmem:[%s2187_s6 + $0x428] sm:$0xff]  ;;  %v1419_v1 = vadd.f32 %v1418_v25, %v1417_v29  ;;  %v1062_v37 = vmul.f32 %v2988_v18, %v2988_v18  ;;  %v1424_v44 = vsel %vm435_vm0, %v1061_v32, 0.0 }
 0x11a   : > { %v701_v12 = vsel %vm435_vm0, %v3180_v55, 0.0 }
 0x11b   : > { %v688_v52 = vadd.f32 %v687_v62, %v686_v9  ;;  %v3188_v62 = vld [vmem:[%s2187_s6 + $0x430] sm:$0xff]  ;;  %v1421_v6 = vadd.f32 %v1420_v35, %v1419_v1  ;;  %v1063_v9 = vmul.f32 %v2996_v21, %v2996_v21  ;;  %v1426_v53 = vsel %vm435_vm0, %v1062_v37, 0.0 }
 0x11c   : > { %v703_v15 = vsel %vm435_vm0, %v3188_v62, 0.0 }
 0x11d   : > { %v690_v59 = vadd.f32 %v689_v11, %v688_v52  ;;  %v3196_v11 = vld [vmem:[%s2187_s6 + $0x438] sm:$0xff]  ;;  %v1423_v49 = vadd.f32 %v1422_v38, %v1421_v6  ;;  %v1064_v52 = vmul.f32 %v3004_v24, %v3004_v24  ;;  %v1428_v61 = vsel %vm435_vm0, %v1063_v9, 0.0 }
 0x11e   : > { %v705_v18 = vsel %vm435_vm0, %v3196_v11, 0.0 }
 0x11f   : > { %v692_v7 = vadd.f32 %v691_v22, %v690_v59  ;;  %v3204_v22 = vld [vmem:[%s2187_s6 + $0x440] sm:$0xff]  ;;  %v1425_v58 = vadd.f32 %v1424_v44, %v1423_v49  ;;  %v1065_v59 = vmul.f32 %v3012_v27, %v3012_v27  ;;  %v1430_v8 = vsel %vm435_vm0, %v1064_v52, 0.0 }
 0x120   : > { %v707_v21 = vsel %vm435_vm0, %v3204_v22, 0.0 }
 0x121   : > { %v694_v17 = vadd.f32 %v693_v31, %v692_v7  ;;  %v3212_v31 = vld [vmem:[%s2187_s6 + $0x448] sm:$0xff]  ;;  %v1427_v4 = vadd.f32 %v1426_v53, %v1425_v58  ;;  %v1066_v7 = vmul.f32 %v3020_v30, %v3020_v30  ;;  %v1432_v20 = vsel %vm435_vm0, %v1065_v59, 0.0 }
 0x122   : > { %v709_v24 = vsel %vm435_vm0, %v3212_v31, 0.0 }
 0x123   : > { %v696_v26 = vadd.f32 %v695_v2, %v694_v17  ;;  %v3220_v2 = vld [vmem:[%s2187_s6 + $0x450] sm:$0xff]  ;;  %v1429_v16 = vadd.f32 %v1428_v61, %v1427_v4  ;;  %v1067_v17 = vmul.f32 %v3028_v33, %v3028_v33  ;;  %v1434_v29 = vsel %vm435_vm0, %v1066_v7, 0.0 }
 0x124   : > { %v711_v27 = vsel %vm435_vm0, %v3220_v2, 0.0 }
 0x125   : > { %v698_v0 = vadd.f32 %v697_v43, %v696_v26  ;;  %v3228_v43 = vld [vmem:[%s2187_s6 + $0x458] sm:$0xff]  ;;  %v1431_v25 = vadd.f32 %v1430_v8, %v1429_v16  ;;  %v1068_v26 = vmul.f32 %v3036_v36, %v3036_v36  ;;  %v1436_v1 = vsel %vm435_vm0, %v1067_v17, 0.0 }
 0x126   : > { %v713_v30 = vsel %vm435_vm0, %v3228_v43, 0.0 }
 0x127   : > { %v700_v41 = vadd.f32 %v699_v50, %v698_v0  ;;  %v3236_v50 = vld [vmem:[%s2187_s6 + $0x460] sm:$0xff]  ;;  %v1433_v35 = vadd.f32 %v1432_v20, %v1431_v25  ;;  %v1069_v0 = vmul.f32 %v3044_v39, %v3044_v39  ;;  %v1438_v6 = vsel %vm435_vm0, %v1068_v26, 0.0 }
 0x128   : > { %v715_v33 = vsel %vm435_vm0, %v3236_v50, 0.0 }
 0x129   : > { %v702_v47 = vadd.f32 %v701_v12, %v700_v41  ;;  %v3244_v12 = vld [vmem:[%s2187_s6 + $0x468] sm:$0xff]  ;;  %v1435_v38 = vadd.f32 %v1434_v29, %v1433_v35  ;;  %v1070_v41 = vmul.f32 %v3052_v42, %v3052_v42  ;;  %v1440_v49 = vsel %vm435_vm0, %v1069_v0, 0.0 }
 0x12a   : > { %v717_v36 = vsel %vm435_vm0, %v3244_v12, 0.0 }
 0x12b   : > { %v704_v56 = vadd.f32 %v703_v15, %v702_v47  ;;  %v3252_v15 = vld [vmem:[%s2187_s6 + $0x470] sm:$0xff]  ;;  %v1437_v44 = vadd.f32 %v1436_v1, %v1435_v38  ;;  %v1071_v47 = vmul.f32 %v3060_v45, %v3060_v45  ;;  %v1442_v58 = vsel %vm435_vm0, %v1070_v41, 0.0 }
 0x12c   : > { %v719_v39 = vsel %vm435_vm0, %v3252_v15, 0.0 }
 0x12d   : > { %v706_v3 = vadd.f32 %v705_v18, %v704_v56  ;;  %v3260_v18 = vld [vmem:[%s2187_s6 + $0x478] sm:$0xff]  ;;  %v1439_v53 = vadd.f32 %v1438_v6, %v1437_v44  ;;  %v1072_v56 = vmul.f32 %v3068_v48, %v3068_v48  ;;  %v1444_v4 = vsel %vm435_vm0, %v1071_v47, 0.0 }
 0x12e   : > { %v721_v42 = vsel %vm435_vm0, %v3260_v18, 0.0 }
 0x12f   : > { %v708_v13 = vadd.f32 %v707_v21, %v706_v3  ;;  %v3268_v21 = vld [vmem:[%s2187_s6 + $0x480] sm:$0xff]  ;;  %v1441_v61 = vadd.f32 %v1440_v49, %v1439_v53  ;;  %v1073_v3 = vmul.f32 %v3076_v51, %v3076_v51  ;;  %v1446_v16 = vsel %vm435_vm0, %v1072_v56, 0.0 }
 0x130   : > { %v723_v45 = vsel %vm435_vm0, %v3268_v21, 0.0 }
 0x131   : > { %v710_v23 = vadd.f32 %v709_v24, %v708_v13  ;;  %v3276_v24 = vld [vmem:[%s2187_s6 + $0x488] sm:$0xff]  ;;  %v1443_v8 = vadd.f32 %v1442_v58, %v1441_v61  ;;  %v1074_v13 = vmul.f32 %v3084_v54, %v3084_v54  ;;  %v1448_v25 = vsel %vm435_vm0, %v1073_v3, 0.0 }
 0x132   : > { %v725_v48 = vsel %vm435_vm0, %v3276_v24, 0.0 }
 0x133   : > { %v712_v32 = vadd.f32 %v711_v27, %v710_v23  ;;  %v3284_v27 = vld [vmem:[%s2187_s6 + $0x490] sm:$0xff]  ;;  %v1445_v20 = vadd.f32 %v1444_v4, %v1443_v8  ;;  %v1075_v23 = vmul.f32 %v3092_v57, %v3092_v57  ;;  %v1450_v35 = vsel %vm435_vm0, %v1074_v13, 0.0 }
 0x134   : > { %v727_v51 = vsel %vm435_vm0, %v3284_v27, 0.0 }
 0x135   : > { %v714_v37 = vadd.f32 %v713_v30, %v712_v32  ;;  %v3292_v30 = vld [vmem:[%s2187_s6 + $0x498] sm:$0xff]  ;;  %v1447_v29 = vadd.f32 %v1446_v16, %v1445_v20  ;;  %v1076_v32 = vmul.f32 %v3100_v60, %v3100_v60  ;;  %v1452_v38 = vsel %vm435_vm0, %v1075_v23, 0.0 }
 0x136   : > { %v729_v54 = vsel %vm435_vm0, %v3292_v30, 0.0 }
 0x137   : > { %v716_v9 = vadd.f32 %v715_v33, %v714_v37  ;;  %v3300_v33 = vld [vmem:[%s2187_s6 + $0x4a0] sm:$0xff]  ;;  %v1449_v1 = vadd.f32 %v1448_v25, %v1447_v29  ;;  %v1077_v37 = vmul.f32 %v3108_v63, %v3108_v63  ;;  %v1454_v44 = vsel %vm435_vm0, %v1076_v32, 0.0 }
 0x138   : > { %v731_v57 = vsel %vm435_vm0, %v3300_v33, 0.0 }
 0x139   : > { %v718_v52 = vadd.f32 %v717_v36, %v716_v9  ;;  %v3308_v36 = vld [vmem:[%s2187_s6 + $0x4a8] sm:$0xff]  ;;  %v1451_v6 = vadd.f32 %v1450_v35, %v1449_v1  ;;  %v1078_v9 = vmul.f32 %v3116_v5, %v3116_v5  ;;  %v1456_v53 = vsel %vm435_vm0, %v1077_v37, 0.0 }
 0x13a   : > { %v733_v60 = vsel %vm435_vm0, %v3308_v36, 0.0 }
 0x13b   : > { %v720_v59 = vadd.f32 %v719_v39, %v718_v52  ;;  %v3316_v39 = vld [vmem:[%s2187_s6 + $0x4b0] sm:$0xff]  ;;  %v1453_v49 = vadd.f32 %v1452_v38, %v1451_v6  ;;  %v1079_v52 = vmul.f32 %v3124_v10, %v3124_v10  ;;  %v1458_v61 = vsel %vm435_vm0, %v1078_v9, 0.0 }
 0x13c   : > { %v735_v63 = vsel %vm435_vm0, %v3316_v39, 0.0 }
 0x13d   : > { %v722_v7 = vadd.f32 %v721_v42, %v720_v59  ;;  %v3324_v42 = vld [vmem:[%s2187_s6 + $0x4b8] sm:$0xff]  ;;  %v1455_v58 = vadd.f32 %v1454_v44, %v1453_v49  ;;  %v1080_v59 = vmul.f32 %v3132_v14, %v3132_v14  ;;  %v1460_v8 = vsel %vm435_vm0, %v1079_v52, 0.0 }
 0x13e   : > { %v737_v5 = vsel %vm435_vm0, %v3324_v42, 0.0 }
 0x13f   : > { %v724_v17 = vadd.f32 %v723_v45, %v722_v7  ;;  %v3332_v45 = vld [vmem:[%s2187_s6 + $0x4c0] sm:$0xff]  ;;  %v1457_v4 = vadd.f32 %v1456_v53, %v1455_v58  ;;  %v1081_v7 = vmul.f32 %v3140_v19, %v3140_v19  ;;  %v1462_v20 = vsel %vm435_vm0, %v1080_v59, 0.0 }
 0x140   : > { %v739_v10 = vsel %vm435_vm0, %v3332_v45, 0.0 }
 0x141   : > { %v726_v26 = vadd.f32 %v725_v48, %v724_v17  ;;  %v3340_v48 = vld [vmem:[%s2187_s6 + $0x4c8] sm:$0xff]  ;;  %v1459_v16 = vadd.f32 %v1458_v61, %v1457_v4  ;;  %v1082_v17 = vmul.f32 %v3148_v28, %v3148_v28  ;;  %v1464_v29 = vsel %vm435_vm0, %v1081_v7, 0.0 }
 0x142   : > { %v741_v14 = vsel %vm435_vm0, %v3340_v48, 0.0 }
 0x143   : > { %v728_v0 = vadd.f32 %v727_v51, %v726_v26  ;;  %v3348_v51 = vld [vmem:[%s2187_s6 + $0x4d0] sm:$0xff]  ;;  %v1461_v25 = vadd.f32 %v1460_v8, %v1459_v16  ;;  %v1083_v26 = vmul.f32 %v3156_v34, %v3156_v34  ;;  %v1466_v1 = vsel %vm435_vm0, %v1082_v17, 0.0 }
 0x144   : > { %v743_v19 = vsel %vm435_vm0, %v3348_v51, 0.0 }
 0x145   : > { %v730_v41 = vadd.f32 %v729_v54, %v728_v0  ;;  %v3356_v54 = vld [vmem:[%s2187_s6 + $0x4d8] sm:$0xff]  ;;  %v1463_v35 = vadd.f32 %v1462_v20, %v1461_v25  ;;  %v1084_v0 = vmul.f32 %v3164_v40, %v3164_v40  ;;  %v1468_v6 = vsel %vm435_vm0, %v1083_v26, 0.0 }
 0x146   : > { %v745_v28 = vsel %vm435_vm0, %v3356_v54, 0.0 }
 0x147   : > { %v732_v47 = vadd.f32 %v731_v57, %v730_v41  ;;  %v3364_v57 = vld [vmem:[%s2187_s6 + $0x4e0] sm:$0xff]  ;;  %v1465_v38 = vadd.f32 %v1464_v29, %v1463_v35  ;;  %v1085_v41 = vmul.f32 %v3172_v46, %v3172_v46  ;;  %v1470_v49 = vsel %vm435_vm0, %v1084_v0, 0.0 }
 0x148   : > { %v747_v34 = vsel %vm435_vm0, %v3364_v57, 0.0 }
 0x149   : > { %v734_v56 = vadd.f32 %v733_v60, %v732_v47  ;;  %v3372_v60 = vld [vmem:[%s2187_s6 + $0x4e8] sm:$0xff]  ;;  %v1467_v44 = vadd.f32 %v1466_v1, %v1465_v38  ;;  %v1086_v47 = vmul.f32 %v3180_v55, %v3180_v55  ;;  %v1472_v58 = vsel %vm435_vm0, %v1085_v41, 0.0 }
 0x14a   : > { %v749_v40 = vsel %vm435_vm0, %v3372_v60, 0.0 }
 0x14b   : > { %v736_v3 = vadd.f32 %v735_v63, %v734_v56  ;;  %v3380_v63 = vld [vmem:[%s2187_s6 + $0x4f0] sm:$0xff]  ;;  %v1469_v53 = vadd.f32 %v1468_v6, %v1467_v44  ;;  %v1087_v56 = vmul.f32 %v3188_v62, %v3188_v62  ;;  %v1474_v4 = vsel %vm435_vm0, %v1086_v47, 0.0 }
 0x14c   : > { %v751_v46 = vsel %vm435_vm0, %v3380_v63, 0.0 }
 0x14d   : > { %v738_v13 = vadd.f32 %v737_v5, %v736_v3  ;;  %v3388_v5 = vld [vmem:[%s2187_s6 + $0x4f8] sm:$0xff]  ;;  %v1471_v61 = vadd.f32 %v1470_v49, %v1469_v53  ;;  %v1088_v3 = vmul.f32 %v3196_v11, %v3196_v11  ;;  %v1476_v16 = vsel %vm435_vm0, %v1087_v56, 0.0 }
 0x14e   : > { %v753_v55 = vsel %vm435_vm0, %v3388_v5, 0.0 }
 0x14f   : > { %v740_v23 = vadd.f32 %v739_v10, %v738_v13  ;;  %v3396_v10 = vld [vmem:[%s2187_s6 + $0x500] sm:$0xff]  ;;  %v1473_v8 = vadd.f32 %v1472_v58, %v1471_v61  ;;  %v1089_v13 = vmul.f32 %v3204_v22, %v3204_v22  ;;  %v1478_v25 = vsel %vm435_vm0, %v1088_v3, 0.0 }
 0x150   : > { %v755_v62 = vsel %vm435_vm0, %v3396_v10, 0.0 }
 0x151   : > { %v742_v32 = vadd.f32 %v741_v14, %v740_v23  ;;  %v3404_v14 = vld [vmem:[%s2187_s6 + $0x508] sm:$0xff]  ;;  %v1475_v20 = vadd.f32 %v1474_v4, %v1473_v8  ;;  %v1090_v23 = vmul.f32 %v3212_v31, %v3212_v31  ;;  %v1480_v35 = vsel %vm435_vm0, %v1089_v13, 0.0 }
 0x152   : > { %v757_v11 = vsel %vm435_vm0, %v3404_v14, 0.0 }
 0x153   : > { %v744_v37 = vadd.f32 %v743_v19, %v742_v32  ;;  %v3412_v19 = vld [vmem:[%s2187_s6 + $0x510] sm:$0xff]  ;;  %v1477_v29 = vadd.f32 %v1476_v16, %v1475_v20  ;;  %v1091_v32 = vmul.f32 %v3220_v2, %v3220_v2  ;;  %v1482_v38 = vsel %vm435_vm0, %v1090_v23, 0.0 }
 0x154   : > { %v759_v22 = vsel %vm435_vm0, %v3412_v19, 0.0 }
 0x155   : > { %v746_v9 = vadd.f32 %v745_v28, %v744_v37  ;;  %v3420_v28 = vld [vmem:[%s2187_s6 + $0x518] sm:$0xff]  ;;  %v1479_v1 = vadd.f32 %v1478_v25, %v1477_v29  ;;  %v1092_v37 = vmul.f32 %v3228_v43, %v3228_v43  ;;  %v1484_v44 = vsel %vm435_vm0, %v1091_v32, 0.0 }
 0x156   : > { %v761_v31 = vsel %vm435_vm0, %v3420_v28, 0.0 }
 0x157   : > { %v748_v52 = vadd.f32 %v747_v34, %v746_v9  ;;  %v3428_v34 = vld [vmem:[%s2187_s6 + $0x520] sm:$0xff]  ;;  %v1481_v6 = vadd.f32 %v1480_v35, %v1479_v1  ;;  %v1093_v9 = vmul.f32 %v3236_v50, %v3236_v50  ;;  %v1486_v53 = vsel %vm435_vm0, %v1092_v37, 0.0 }
 0x158   : > { %v763_v2 = vsel %vm435_vm0, %v3428_v34, 0.0 }
 0x159   : > { %v750_v59 = vadd.f32 %v749_v40, %v748_v52  ;;  %v3436_v40 = vld [vmem:[%s2187_s6 + $0x528] sm:$0xff]  ;;  %v1483_v49 = vadd.f32 %v1482_v38, %v1481_v6  ;;  %v1094_v52 = vmul.f32 %v3244_v12, %v3244_v12  ;;  %v1488_v61 = vsel %vm435_vm0, %v1093_v9, 0.0 }
 0x15a   : > { %v765_v43 = vsel %vm435_vm0, %v3436_v40, 0.0 }
 0x15b   : > { %v752_v7 = vadd.f32 %v751_v46, %v750_v59  ;;  %v3444_v46 = vld [vmem:[%s2187_s6 + $0x530] sm:$0xff]  ;;  %v1485_v58 = vadd.f32 %v1484_v44, %v1483_v49  ;;  %v1095_v59 = vmul.f32 %v3252_v15, %v3252_v15  ;;  %v1490_v8 = vsel %vm435_vm0, %v1094_v52, 0.0 }
 0x15c   : > { %v767_v50 = vsel %vm435_vm0, %v3444_v46, 0.0 }
 0x15d   : > { %v754_v17 = vadd.f32 %v753_v55, %v752_v7  ;;  %v3452_v55 = vld [vmem:[%s2187_s6 + $0x538] sm:$0xff]  ;;  %v1487_v4 = vadd.f32 %v1486_v53, %v1485_v58  ;;  %v1096_v7 = vmul.f32 %v3260_v18, %v3260_v18  ;;  %v1492_v20 = vsel %vm435_vm0, %v1095_v59, 0.0 }
 0x15e   : > { %v769_v12 = vsel %vm435_vm0, %v3452_v55, 0.0 }
 0x15f   : > { %v756_v26 = vadd.f32 %v755_v62, %v754_v17  ;;  %v3460_v62 = vld [vmem:[%s2187_s6 + $0x540] sm:$0xff]  ;;  %v1489_v16 = vadd.f32 %v1488_v61, %v1487_v4  ;;  %v1097_v17 = vmul.f32 %v3268_v21, %v3268_v21  ;;  %v1494_v29 = vsel %vm435_vm0, %v1096_v7, 0.0 }
 0x160   : > { %v771_v15 = vsel %vm435_vm0, %v3460_v62, 0.0 }
 0x161   : > { %v758_v0 = vadd.f32 %v757_v11, %v756_v26  ;;  %v3468_v11 = vld [vmem:[%s2187_s6 + $0x548] sm:$0xff]  ;;  %v1491_v25 = vadd.f32 %v1490_v8, %v1489_v16  ;;  %v1098_v26 = vmul.f32 %v3276_v24, %v3276_v24  ;;  %v1496_v1 = vsel %vm435_vm0, %v1097_v17, 0.0 }
 0x162   : > { %v773_v18 = vsel %vm435_vm0, %v3468_v11, 0.0 }
 0x163   : > { %v760_v41 = vadd.f32 %v759_v22, %v758_v0  ;;  %v3476_v22 = vld [vmem:[%s2187_s6 + $0x550] sm:$0xff]  ;;  %v1493_v35 = vadd.f32 %v1492_v20, %v1491_v25  ;;  %v1099_v0 = vmul.f32 %v3284_v27, %v3284_v27  ;;  %v1498_v6 = vsel %vm435_vm0, %v1098_v26, 0.0 }
 0x164   : > { %v775_v21 = vsel %vm435_vm0, %v3476_v22, 0.0 }
 0x165   : > { %v762_v47 = vadd.f32 %v761_v31, %v760_v41  ;;  %v3484_v31 = vld [vmem:[%s2187_s6 + $0x558] sm:$0xff]  ;;  %v1495_v38 = vadd.f32 %v1494_v29, %v1493_v35  ;;  %v1100_v41 = vmul.f32 %v3292_v30, %v3292_v30  ;;  %v1500_v49 = vsel %vm435_vm0, %v1099_v0, 0.0 }
 0x166   : > { %v777_v24 = vsel %vm435_vm0, %v3484_v31, 0.0 }
 0x167   : > { %v764_v56 = vadd.f32 %v763_v2, %v762_v47  ;;  %v3492_v2 = vld [vmem:[%s2187_s6 + $0x560] sm:$0xff]  ;;  %v1497_v44 = vadd.f32 %v1496_v1, %v1495_v38  ;;  %v1101_v47 = vmul.f32 %v3300_v33, %v3300_v33  ;;  %v1502_v58 = vsel %vm435_vm0, %v1100_v41, 0.0 }
 0x168   : > { %v779_v27 = vsel %vm435_vm0, %v3492_v2, 0.0 }
 0x169   : > { %v766_v3 = vadd.f32 %v765_v43, %v764_v56  ;;  %v3500_v43 = vld [vmem:[%s2187_s6 + $0x568] sm:$0xff]  ;;  %v1499_v53 = vadd.f32 %v1498_v6, %v1497_v44  ;;  %v1102_v56 = vmul.f32 %v3308_v36, %v3308_v36  ;;  %v1504_v4 = vsel %vm435_vm0, %v1101_v47, 0.0 }
 0x16a   : > { %v781_v30 = vsel %vm435_vm0, %v3500_v43, 0.0 }
 0x16b   : > { %v768_v13 = vadd.f32 %v767_v50, %v766_v3  ;;  %v3508_v50 = vld [vmem:[%s2187_s6 + $0x570] sm:$0xff]  ;;  %v1501_v61 = vadd.f32 %v1500_v49, %v1499_v53  ;;  %v1103_v3 = vmul.f32 %v3316_v39, %v3316_v39  ;;  %v1506_v16 = vsel %vm435_vm0, %v1102_v56, 0.0 }
 0x16c   : > { %v783_v33 = vsel %vm435_vm0, %v3508_v50, 0.0 }
 0x16d   : > { %v770_v23 = vadd.f32 %v769_v12, %v768_v13  ;;  %v3516_v12 = vld [vmem:[%s2187_s6 + $0x578] sm:$0xff]  ;;  %v1503_v8 = vadd.f32 %v1502_v58, %v1501_v61  ;;  %v1104_v13 = vmul.f32 %v3324_v42, %v3324_v42  ;;  %v1508_v25 = vsel %vm435_vm0, %v1103_v3, 0.0 }
 0x16e   : > { %v785_v36 = vsel %vm435_vm0, %v3516_v12, 0.0 }
 0x16f   : > { %v772_v32 = vadd.f32 %v771_v15, %v770_v23  ;;  %v3524_v15 = vld [vmem:[%s2187_s6 + $0x580] sm:$0xff]  ;;  %v1505_v20 = vadd.f32 %v1504_v4, %v1503_v8  ;;  %v1105_v23 = vmul.f32 %v3332_v45, %v3332_v45  ;;  %v1510_v35 = vsel %vm435_vm0, %v1104_v13, 0.0 }
 0x170   : > { %v787_v39 = vsel %vm435_vm0, %v3524_v15, 0.0 }
 0x171   : > { %v774_v37 = vadd.f32 %v773_v18, %v772_v32  ;;  %v3532_v18 = vld [vmem:[%s2187_s6 + $0x588] sm:$0xff]  ;;  %v1507_v29 = vadd.f32 %v1506_v16, %v1505_v20  ;;  %v1106_v32 = vmul.f32 %v3340_v48, %v3340_v48  ;;  %v1512_v38 = vsel %vm435_vm0, %v1105_v23, 0.0 }
 0x172   : > { %v789_v42 = vsel %vm435_vm0, %v3532_v18, 0.0 }
 0x173   : > { %v776_v9 = vadd.f32 %v775_v21, %v774_v37  ;;  %v3540_v21 = vld [vmem:[%s2187_s6 + $0x590] sm:$0xff]  ;;  %v1509_v1 = vadd.f32 %v1508_v25, %v1507_v29  ;;  %v1107_v37 = vmul.f32 %v3348_v51, %v3348_v51  ;;  %v1514_v44 = vsel %vm435_vm0, %v1106_v32, 0.0 }
 0x174   : > { %v791_v45 = vsel %vm435_vm0, %v3540_v21, 0.0 }
 0x175   : > { %v778_v52 = vadd.f32 %v777_v24, %v776_v9  ;;  %v3548_v24 = vld [vmem:[%s2187_s6 + $0x598] sm:$0xff]  ;;  %v1511_v6 = vadd.f32 %v1510_v35, %v1509_v1  ;;  %v1108_v9 = vmul.f32 %v3356_v54, %v3356_v54  ;;  %v1516_v53 = vsel %vm435_vm0, %v1107_v37, 0.0 }
 0x176   : > { %v793_v48 = vsel %vm435_vm0, %v3548_v24, 0.0 }
 0x177   : > { %v780_v59 = vadd.f32 %v779_v27, %v778_v52  ;;  %v3556_v27 = vld [vmem:[%s2187_s6 + $0x5a0] sm:$0xff]  ;;  %v1513_v49 = vadd.f32 %v1512_v38, %v1511_v6  ;;  %v1109_v52 = vmul.f32 %v3364_v57, %v3364_v57  ;;  %v1518_v61 = vsel %vm435_vm0, %v1108_v9, 0.0 }
 0x178   : > { %v795_v51 = vsel %vm435_vm0, %v3556_v27, 0.0 }
 0x179   : > { %v782_v7 = vadd.f32 %v781_v30, %v780_v59  ;;  %v3564_v30 = vld [vmem:[%s2187_s6 + $0x5a8] sm:$0xff]  ;;  %v1515_v58 = vadd.f32 %v1514_v44, %v1513_v49  ;;  %v1110_v59 = vmul.f32 %v3372_v60, %v3372_v60  ;;  %v1520_v8 = vsel %vm435_vm0, %v1109_v52, 0.0 }
 0x17a   : > { %v797_v54 = vsel %vm435_vm0, %v3564_v30, 0.0 }
 0x17b   : > { %v784_v17 = vadd.f32 %v783_v33, %v782_v7  ;;  %v3572_v33 = vld [vmem:[%s2187_s6 + $0x5b0] sm:$0xff]  ;;  %v1517_v4 = vadd.f32 %v1516_v53, %v1515_v58  ;;  %v1111_v7 = vmul.f32 %v3380_v63, %v3380_v63  ;;  %v1522_v20 = vsel %vm435_vm0, %v1110_v59, 0.0 }
 0x17c   : > { %v799_v57 = vsel %vm435_vm0, %v3572_v33, 0.0 }
 0x17d   : > { %v786_v26 = vadd.f32 %v785_v36, %v784_v17  ;;  %v3580_v36 = vld [vmem:[%s2187_s6 + $0x5b8] sm:$0xff]  ;;  %v1519_v16 = vadd.f32 %v1518_v61, %v1517_v4  ;;  %v1112_v17 = vmul.f32 %v3388_v5, %v3388_v5  ;;  %v1524_v29 = vsel %vm435_vm0, %v1111_v7, 0.0 }
 0x17e   : > { %v801_v60 = vsel %vm435_vm0, %v3580_v36, 0.0 }
 0x17f   : > { %v788_v0 = vadd.f32 %v787_v39, %v786_v26  ;;  %v3588_v39 = vld [vmem:[%s2187_s6 + $0x5c0] sm:$0xff]  ;;  %v1521_v25 = vadd.f32 %v1520_v8, %v1519_v16  ;;  %v1113_v26 = vmul.f32 %v3396_v10, %v3396_v10  ;;  %v1526_v1 = vsel %vm435_vm0, %v1112_v17, 0.0 }
 0x180   : > { %v803_v63 = vsel %vm435_vm0, %v3588_v39, 0.0 }
 0x181   : > { %v790_v41 = vadd.f32 %v789_v42, %v788_v0  ;;  %v3596_v42 = vld [vmem:[%s2187_s6 + $0x5c8] sm:$0xff]  ;;  %v1523_v35 = vadd.f32 %v1522_v20, %v1521_v25  ;;  %v1114_v0 = vmul.f32 %v3404_v14, %v3404_v14  ;;  %v1528_v6 = vsel %vm435_vm0, %v1113_v26, 0.0 }
 0x182   : > { %v805_v5 = vsel %vm435_vm0, %v3596_v42, 0.0 }
 0x183   : > { %v792_v47 = vadd.f32 %v791_v45, %v790_v41  ;;  %v3604_v45 = vld [vmem:[%s2187_s6 + $0x5d0] sm:$0xff]  ;;  %v1525_v38 = vadd.f32 %v1524_v29, %v1523_v35  ;;  %v1115_v41 = vmul.f32 %v3412_v19, %v3412_v19  ;;  %v1530_v49 = vsel %vm435_vm0, %v1114_v0, 0.0 }
 0x184   : > { %v807_v10 = vsel %vm435_vm0, %v3604_v45, 0.0 }
 0x185   : > { %v794_v56 = vadd.f32 %v793_v48, %v792_v47  ;;  %v3612_v48 = vld [vmem:[%s2187_s6 + $0x5d8] sm:$0xff]  ;;  %v1527_v44 = vadd.f32 %v1526_v1, %v1525_v38  ;;  %v1116_v47 = vmul.f32 %v3420_v28, %v3420_v28  ;;  %v1532_v58 = vsel %vm435_vm0, %v1115_v41, 0.0 }
 0x186   : > { %v809_v14 = vsel %vm435_vm0, %v3612_v48, 0.0 }
 0x187   : > { %v796_v3 = vadd.f32 %v795_v51, %v794_v56  ;;  %v3620_v51 = vld [vmem:[%s2187_s6 + $0x5e0] sm:$0xff]  ;;  %v1529_v53 = vadd.f32 %v1528_v6, %v1527_v44  ;;  %v1117_v56 = vmul.f32 %v3428_v34, %v3428_v34  ;;  %v1534_v4 = vsel %vm435_vm0, %v1116_v47, 0.0 }
 0x188   : > { %v811_v19 = vsel %vm435_vm0, %v3620_v51, 0.0 }
 0x189   : > { %v798_v13 = vadd.f32 %v797_v54, %v796_v3  ;;  %v3628_v54 = vld [vmem:[%s2187_s6 + $0x5e8] sm:$0xff]  ;;  %v1531_v61 = vadd.f32 %v1530_v49, %v1529_v53  ;;  %v1118_v3 = vmul.f32 %v3436_v40, %v3436_v40  ;;  %v1536_v16 = vsel %vm435_vm0, %v1117_v56, 0.0 }
 0x18a   : > { %v813_v28 = vsel %vm435_vm0, %v3628_v54, 0.0 }
 0x18b   : > { %v800_v23 = vadd.f32 %v799_v57, %v798_v13  ;;  %v3636_v57 = vld [vmem:[%s2187_s6 + $0x5f0] sm:$0xff]  ;;  %v1533_v8 = vadd.f32 %v1532_v58, %v1531_v61  ;;  %v1119_v13 = vmul.f32 %v3444_v46, %v3444_v46  ;;  %v1538_v25 = vsel %vm435_vm0, %v1118_v3, 0.0 }
 0x18c   : > { %v815_v34 = vsel %vm435_vm0, %v3636_v57, 0.0 }
 0x18d   : > { %v802_v32 = vadd.f32 %v801_v60, %v800_v23  ;;  %v3644_v60 = vld [vmem:[%s2187_s6 + $0x5f8] sm:$0xff]  ;;  %v1535_v20 = vadd.f32 %v1534_v4, %v1533_v8  ;;  %v1120_v23 = vmul.f32 %v3452_v55, %v3452_v55  ;;  %v1540_v35 = vsel %vm435_vm0, %v1119_v13, 0.0 }
 0x18e   : > { %v817_v40 = vsel %vm435_vm0, %v3644_v60, 0.0 }
 0x18f   : > { %v804_v37 = vadd.f32 %v803_v63, %v802_v32  ;;  %v3652_v63 = vld [vmem:[%s2187_s6 + $0x600] sm:$0xff]  ;;  %v1537_v29 = vadd.f32 %v1536_v16, %v1535_v20  ;;  %v1121_v32 = vmul.f32 %v3460_v62, %v3460_v62  ;;  %v1542_v38 = vsel %vm435_vm0, %v1120_v23, 0.0 }
 0x190   : > { %v819_v46 = vsel %vm435_vm0, %v3652_v63, 0.0 }
 0x191   : > { %v806_v9 = vadd.f32 %v805_v5, %v804_v37  ;;  %v3660_v5 = vld [vmem:[%s2187_s6 + $0x608] sm:$0xff]  ;;  %v1539_v1 = vadd.f32 %v1538_v25, %v1537_v29  ;;  %v1122_v37 = vmul.f32 %v3468_v11, %v3468_v11  ;;  %v1544_v44 = vsel %vm435_vm0, %v1121_v32, 0.0 }
 0x192   : > { %v821_v55 = vsel %vm435_vm0, %v3660_v5, 0.0 }
 0x193   : > { %v808_v52 = vadd.f32 %v807_v10, %v806_v9  ;;  %v3668_v10 = vld [vmem:[%s2187_s6 + $0x610] sm:$0xff]  ;;  %v1541_v6 = vadd.f32 %v1540_v35, %v1539_v1  ;;  %v1123_v9 = vmul.f32 %v3476_v22, %v3476_v22  ;;  %v1546_v53 = vsel %vm435_vm0, %v1122_v37, 0.0 }
 0x194   : > { %v823_v62 = vsel %vm435_vm0, %v3668_v10, 0.0 }
 0x195   : > { %v810_v59 = vadd.f32 %v809_v14, %v808_v52  ;;  %v3676_v14 = vld [vmem:[%s2187_s6 + $0x618] sm:$0xff]  ;;  %v1543_v49 = vadd.f32 %v1542_v38, %v1541_v6  ;;  %v1124_v52 = vmul.f32 %v3484_v31, %v3484_v31  ;;  %v1548_v61 = vsel %vm435_vm0, %v1123_v9, 0.0 }
 0x196   : > { %v825_v11 = vsel %vm435_vm0, %v3676_v14, 0.0 }
 0x197   : > { %v812_v7 = vadd.f32 %v811_v19, %v810_v59  ;;  %v3684_v19 = vld [vmem:[%s2187_s6 + $0x620] sm:$0xff]  ;;  %v1545_v58 = vadd.f32 %v1544_v44, %v1543_v49  ;;  %v1125_v59 = vmul.f32 %v3492_v2, %v3492_v2  ;;  %v1550_v8 = vsel %vm435_vm0, %v1124_v52, 0.0 }
 0x198   : > { %v827_v22 = vsel %vm435_vm0, %v3684_v19, 0.0 }
 0x199   : > { %v814_v17 = vadd.f32 %v813_v28, %v812_v7  ;;  %v3692_v28 = vld [vmem:[%s2187_s6 + $0x628] sm:$0xff]  ;;  %v1547_v4 = vadd.f32 %v1546_v53, %v1545_v58  ;;  %v1126_v7 = vmul.f32 %v3500_v43, %v3500_v43  ;;  %v1552_v20 = vsel %vm435_vm0, %v1125_v59, 0.0 }
 0x19a   : > { %v829_v31 = vsel %vm435_vm0, %v3692_v28, 0.0 }
 0x19b   : > { %v816_v26 = vadd.f32 %v815_v34, %v814_v17  ;;  %v3700_v34 = vld [vmem:[%s2187_s6 + $0x630] sm:$0xff]  ;;  %v1549_v16 = vadd.f32 %v1548_v61, %v1547_v4  ;;  %v1127_v17 = vmul.f32 %v3508_v50, %v3508_v50  ;;  %v1554_v29 = vsel %vm435_vm0, %v1126_v7, 0.0 }
 0x19c   : > { %v831_v2 = vsel %vm435_vm0, %v3700_v34, 0.0 }
 0x19d   : > { %v818_v0 = vadd.f32 %v817_v40, %v816_v26  ;;  %v3708_v40 = vld [vmem:[%s2187_s6 + $0x638] sm:$0xff]  ;;  %v1551_v25 = vadd.f32 %v1550_v8, %v1549_v16  ;;  %v1128_v26 = vmul.f32 %v3516_v12, %v3516_v12  ;;  %v1556_v1 = vsel %vm435_vm0, %v1127_v17, 0.0 }
 0x19e   : > { %v833_v43 = vsel %vm435_vm0, %v3708_v40, 0.0 }
 0x19f   : > { %v820_v41 = vadd.f32 %v819_v46, %v818_v0  ;;  %v3716_v46 = vld [vmem:[%s2187_s6 + $0x640] sm:$0xff]  ;;  %v1553_v35 = vadd.f32 %v1552_v20, %v1551_v25  ;;  %v1129_v0 = vmul.f32 %v3524_v15, %v3524_v15  ;;  %v1558_v6 = vsel %vm435_vm0, %v1128_v26, 0.0 }
 0x1a0   : > { %v835_v50 = vsel %vm435_vm0, %v3716_v46, 0.0 }
 0x1a1   : > { %v822_v47 = vadd.f32 %v821_v55, %v820_v41  ;;  %v3724_v55 = vld [vmem:[%s2187_s6 + $0x648] sm:$0xff]  ;;  %v1555_v38 = vadd.f32 %v1554_v29, %v1553_v35  ;;  %v1130_v41 = vmul.f32 %v3532_v18, %v3532_v18  ;;  %v1560_v49 = vsel %vm435_vm0, %v1129_v0, 0.0 }
 0x1a2   : > { %v837_v12 = vsel %vm435_vm0, %v3724_v55, 0.0 }
 0x1a3   : > { %v824_v56 = vadd.f32 %v823_v62, %v822_v47  ;;  %v3732_v62 = vld [vmem:[%s2187_s6 + $0x650] sm:$0xff]  ;;  %v1557_v44 = vadd.f32 %v1556_v1, %v1555_v38  ;;  %v1131_v47 = vmul.f32 %v3540_v21, %v3540_v21  ;;  %v1562_v58 = vsel %vm435_vm0, %v1130_v41, 0.0 }
 0x1a4   : > { %v839_v15 = vsel %vm435_vm0, %v3732_v62, 0.0 }
 0x1a5   : > { %v826_v3 = vadd.f32 %v825_v11, %v824_v56  ;;  %v3740_v11 = vld [vmem:[%s2187_s6 + $0x658] sm:$0xff]  ;;  %v1559_v53 = vadd.f32 %v1558_v6, %v1557_v44  ;;  %v1132_v56 = vmul.f32 %v3548_v24, %v3548_v24  ;;  %v1564_v4 = vsel %vm435_vm0, %v1131_v47, 0.0 }
 0x1a6   : > { %v841_v18 = vsel %vm435_vm0, %v3740_v11, 0.0 }
 0x1a7   : > { %v828_v13 = vadd.f32 %v827_v22, %v826_v3  ;;  %v3748_v22 = vld [vmem:[%s2187_s6 + $0x660] sm:$0xff]  ;;  %v1561_v61 = vadd.f32 %v1560_v49, %v1559_v53  ;;  %v1133_v3 = vmul.f32 %v3556_v27, %v3556_v27  ;;  %v1566_v16 = vsel %vm435_vm0, %v1132_v56, 0.0 }
 0x1a8   : > { %v843_v21 = vsel %vm435_vm0, %v3748_v22, 0.0 }
 0x1a9   : > { %v830_v23 = vadd.f32 %v829_v31, %v828_v13  ;;  %v3756_v31 = vld [vmem:[%s2187_s6 + $0x668] sm:$0xff]  ;;  %v1563_v8 = vadd.f32 %v1562_v58, %v1561_v61  ;;  %v1134_v13 = vmul.f32 %v3564_v30, %v3564_v30  ;;  %v1568_v25 = vsel %vm435_vm0, %v1133_v3, 0.0 }
 0x1aa   : > { %v845_v24 = vsel %vm435_vm0, %v3756_v31, 0.0 }
 0x1ab   : > { %v832_v32 = vadd.f32 %v831_v2, %v830_v23  ;;  %v3764_v2 = vld [vmem:[%s2187_s6 + $0x670] sm:$0xff]  ;;  %v1565_v20 = vadd.f32 %v1564_v4, %v1563_v8  ;;  %v1135_v23 = vmul.f32 %v3572_v33, %v3572_v33  ;;  %v1570_v35 = vsel %vm435_vm0, %v1134_v13, 0.0 }
 0x1ac   : > { %v847_v27 = vsel %vm435_vm0, %v3764_v2, 0.0 }
 0x1ad   : > { %v834_v37 = vadd.f32 %v833_v43, %v832_v32  ;;  %v3772_v43 = vld [vmem:[%s2187_s6 + $0x678] sm:$0xff]  ;;  %v1567_v29 = vadd.f32 %v1566_v16, %v1565_v20  ;;  %v1136_v32 = vmul.f32 %v3580_v36, %v3580_v36  ;;  %v1572_v38 = vsel %vm435_vm0, %v1135_v23, 0.0 }
 0x1ae   : > { %v849_v30 = vsel %vm435_vm0, %v3772_v43, 0.0 }
 0x1af   : > { %v836_v9 = vadd.f32 %v835_v50, %v834_v37  ;;  %v3780_v50 = vld [vmem:[%s2187_s6 + $0x680] sm:$0xff]  ;;  %v1569_v1 = vadd.f32 %v1568_v25, %v1567_v29  ;;  %v1137_v37 = vmul.f32 %v3588_v39, %v3588_v39  ;;  %v1574_v44 = vsel %vm435_vm0, %v1136_v32, 0.0 }
 0x1b0   : > { %v851_v33 = vsel %vm435_vm0, %v3780_v50, 0.0 }
 0x1b1   : > { %v838_v52 = vadd.f32 %v837_v12, %v836_v9  ;;  %v3788_v12 = vld [vmem:[%s2187_s6 + $0x688] sm:$0xff]  ;;  %v1571_v6 = vadd.f32 %v1570_v35, %v1569_v1  ;;  %v1138_v9 = vmul.f32 %v3596_v42, %v3596_v42  ;;  %v1576_v53 = vsel %vm435_vm0, %v1137_v37, 0.0 }
 0x1b2   : > { %v853_v36 = vsel %vm435_vm0, %v3788_v12, 0.0 }
 0x1b3   : > { %v840_v59 = vadd.f32 %v839_v15, %v838_v52  ;;  %v3796_v15 = vld [vmem:[%s2187_s6 + $0x690] sm:$0xff]  ;;  %v1573_v49 = vadd.f32 %v1572_v38, %v1571_v6  ;;  %v1139_v52 = vmul.f32 %v3604_v45, %v3604_v45  ;;  %v1578_v61 = vsel %vm435_vm0, %v1138_v9, 0.0 }
 0x1b4   : > { %v855_v39 = vsel %vm435_vm0, %v3796_v15, 0.0 }
 0x1b5   : > { %v842_v7 = vadd.f32 %v841_v18, %v840_v59  ;;  %v3804_v18 = vld [vmem:[%s2187_s6 + $0x698] sm:$0xff]  ;;  %v1575_v58 = vadd.f32 %v1574_v44, %v1573_v49  ;;  %v1140_v59 = vmul.f32 %v3612_v48, %v3612_v48  ;;  %v1580_v8 = vsel %vm435_vm0, %v1139_v52, 0.0 }
 0x1b6   : > { %v857_v42 = vsel %vm435_vm0, %v3804_v18, 0.0 }
 0x1b7   : > { %v844_v17 = vadd.f32 %v843_v21, %v842_v7  ;;  %v3812_v21 = vld [vmem:[%s2187_s6 + $0x6a0] sm:$0xff]  ;;  %v1577_v4 = vadd.f32 %v1576_v53, %v1575_v58  ;;  %v1141_v7 = vmul.f32 %v3620_v51, %v3620_v51  ;;  %v1582_v20 = vsel %vm435_vm0, %v1140_v59, 0.0 }
 0x1b8   : > { %v859_v45 = vsel %vm435_vm0, %v3812_v21, 0.0 }
 0x1b9   : > { %v846_v26 = vadd.f32 %v845_v24, %v844_v17  ;;  %v3820_v24 = vld [vmem:[%s2187_s6 + $0x6a8] sm:$0xff]  ;;  %v1579_v16 = vadd.f32 %v1578_v61, %v1577_v4  ;;  %v1142_v17 = vmul.f32 %v3628_v54, %v3628_v54  ;;  %v1584_v29 = vsel %vm435_vm0, %v1141_v7, 0.0 }
 0x1ba   : > { %v861_v48 = vsel %vm435_vm0, %v3820_v24, 0.0 }
 0x1bb   : > { %v848_v0 = vadd.f32 %v847_v27, %v846_v26  ;;  %v3828_v27 = vld [vmem:[%s2187_s6 + $0x6b0] sm:$0xff]  ;;  %v1581_v25 = vadd.f32 %v1580_v8, %v1579_v16  ;;  %v1143_v26 = vmul.f32 %v3636_v57, %v3636_v57  ;;  %v1586_v1 = vsel %vm435_vm0, %v1142_v17, 0.0 }
 0x1bc   : > { %v863_v51 = vsel %vm435_vm0, %v3828_v27, 0.0 }
 0x1bd   : > { %v850_v41 = vadd.f32 %v849_v30, %v848_v0  ;;  %v3836_v30 = vld [vmem:[%s2187_s6 + $0x6b8] sm:$0xff]  ;;  %v1583_v35 = vadd.f32 %v1582_v20, %v1581_v25  ;;  %v1144_v0 = vmul.f32 %v3644_v60, %v3644_v60  ;;  %v1588_v6 = vsel %vm435_vm0, %v1143_v26, 0.0 }
 0x1be   : > { %v865_v54 = vsel %vm435_vm0, %v3836_v30, 0.0 }
 0x1bf   : > { %v852_v47 = vadd.f32 %v851_v33, %v850_v41  ;;  %v3844_v33 = vld [vmem:[%s2187_s6 + $0x6c0] sm:$0xff]  ;;  %v1585_v38 = vadd.f32 %v1584_v29, %v1583_v35  ;;  %v1145_v41 = vmul.f32 %v3652_v63, %v3652_v63  ;;  %v1590_v49 = vsel %vm435_vm0, %v1144_v0, 0.0 }
 0x1c0   : > { %v867_v57 = vsel %vm435_vm0, %v3844_v33, 0.0 }
 0x1c1   : > { %v854_v56 = vadd.f32 %v853_v36, %v852_v47  ;;  %v3852_v36 = vld [vmem:[%s2187_s6 + $0x6c8] sm:$0xff]  ;;  %v1587_v44 = vadd.f32 %v1586_v1, %v1585_v38  ;;  %v1146_v47 = vmul.f32 %v3660_v5, %v3660_v5  ;;  %v1592_v58 = vsel %vm435_vm0, %v1145_v41, 0.0 }
 0x1c2   : > { %v869_v60 = vsel %vm435_vm0, %v3852_v36, 0.0 }
 0x1c3   : > { %v856_v3 = vadd.f32 %v855_v39, %v854_v56  ;;  %v3860_v39 = vld [vmem:[%s2187_s6 + $0x6d0] sm:$0xff]  ;;  %v1589_v53 = vadd.f32 %v1588_v6, %v1587_v44  ;;  %v1147_v56 = vmul.f32 %v3668_v10, %v3668_v10  ;;  %v1594_v4 = vsel %vm435_vm0, %v1146_v47, 0.0 }
 0x1c4   : > { %v871_v63 = vsel %vm435_vm0, %v3860_v39, 0.0 }
 0x1c5   : > { %v858_v13 = vadd.f32 %v857_v42, %v856_v3  ;;  %v3868_v42 = vld [vmem:[%s2187_s6 + $0x6d8] sm:$0xff]  ;;  %v1591_v61 = vadd.f32 %v1590_v49, %v1589_v53  ;;  %v1148_v3 = vmul.f32 %v3676_v14, %v3676_v14  ;;  %v1596_v16 = vsel %vm435_vm0, %v1147_v56, 0.0 }
 0x1c6   : > { %v873_v5 = vsel %vm435_vm0, %v3868_v42, 0.0 }
 0x1c7   : > { %v860_v23 = vadd.f32 %v859_v45, %v858_v13  ;;  %v3876_v45 = vld [vmem:[%s2187_s6 + $0x6e0] sm:$0xff]  ;;  %v1593_v8 = vadd.f32 %v1592_v58, %v1591_v61  ;;  %v1149_v13 = vmul.f32 %v3684_v19, %v3684_v19  ;;  %v1598_v25 = vsel %vm435_vm0, %v1148_v3, 0.0 }
 0x1c8   : > { %v875_v10 = vsel %vm435_vm0, %v3876_v45, 0.0 }
 0x1c9   : > { %v862_v32 = vadd.f32 %v861_v48, %v860_v23  ;;  %v3884_v48 = vld [vmem:[%s2187_s6 + $0x6e8] sm:$0xff]  ;;  %v1595_v20 = vadd.f32 %v1594_v4, %v1593_v8  ;;  %v1150_v23 = vmul.f32 %v3692_v28, %v3692_v28  ;;  %v1600_v35 = vsel %vm435_vm0, %v1149_v13, 0.0 }
 0x1ca   : > { %v877_v14 = vsel %vm435_vm0, %v3884_v48, 0.0 }
 0x1cb   : > { %v864_v37 = vadd.f32 %v863_v51, %v862_v32  ;;  %v3892_v51 = vld [vmem:[%s2187_s6 + $0x6f0] sm:$0xff]  ;;  %v1597_v29 = vadd.f32 %v1596_v16, %v1595_v20  ;;  %v1151_v32 = vmul.f32 %v3700_v34, %v3700_v34  ;;  %v1602_v38 = vsel %vm435_vm0, %v1150_v23, 0.0 }
 0x1cc   : > { %v879_v19 = vsel %vm435_vm0, %v3892_v51, 0.0 }
 0x1cd   : > { %v866_v9 = vadd.f32 %v865_v54, %v864_v37  ;;  %v3900_v54 = vld [vmem:[%s2187_s6 + $0x6f8] sm:$0xff]  ;;  %v1599_v1 = vadd.f32 %v1598_v25, %v1597_v29  ;;  %v1152_v37 = vmul.f32 %v3708_v40, %v3708_v40  ;;  %v1604_v44 = vsel %vm435_vm0, %v1151_v32, 0.0 }
 0x1ce   : > { %v881_v28 = vsel %vm435_vm0, %v3900_v54, 0.0 }
 0x1cf   : > { %v868_v52 = vadd.f32 %v867_v57, %v866_v9  ;;  %v3908_v57 = vld [vmem:[%s2187_s6 + $0x700] sm:$0xff]  ;;  %v1601_v6 = vadd.f32 %v1600_v35, %v1599_v1  ;;  %v1153_v9 = vmul.f32 %v3716_v46, %v3716_v46  ;;  %v1606_v53 = vsel %vm435_vm0, %v1152_v37, 0.0 }
 0x1d0   : > { %v883_v34 = vsel %vm435_vm0, %v3908_v57, 0.0 }
 0x1d1   : > { %v870_v59 = vadd.f32 %v869_v60, %v868_v52  ;;  %v3916_v60 = vld [vmem:[%s2187_s6 + $0x708] sm:$0xff]  ;;  %v1603_v49 = vadd.f32 %v1602_v38, %v1601_v6  ;;  %v1154_v52 = vmul.f32 %v3724_v55, %v3724_v55  ;;  %v1608_v61 = vsel %vm435_vm0, %v1153_v9, 0.0 }
 0x1d2   : > { %v885_v40 = vsel %vm435_vm0, %v3916_v60, 0.0 }
 0x1d3   : > { %v872_v7 = vadd.f32 %v871_v63, %v870_v59  ;;  %v3924_v63 = vld [vmem:[%s2187_s6 + $0x710] sm:$0xff]  ;;  %v1605_v58 = vadd.f32 %v1604_v44, %v1603_v49  ;;  %v1155_v59 = vmul.f32 %v3732_v62, %v3732_v62  ;;  %v1610_v8 = vsel %vm435_vm0, %v1154_v52, 0.0 }
 0x1d4   : > { %v887_v46 = vsel %vm435_vm0, %v3924_v63, 0.0 }
 0x1d5   : > { %v874_v17 = vadd.f32 %v873_v5, %v872_v7  ;;  %v3932_v5 = vld [vmem:[%s2187_s6 + $0x718] sm:$0xff]  ;;  %v1607_v4 = vadd.f32 %v1606_v53, %v1605_v58  ;;  %v1156_v7 = vmul.f32 %v3740_v11, %v3740_v11  ;;  %v1612_v20 = vsel %vm435_vm0, %v1155_v59, 0.0 }
 0x1d6   : > { %v889_v55 = vsel %vm435_vm0, %v3932_v5, 0.0 }
 0x1d7   : > { %v876_v26 = vadd.f32 %v875_v10, %v874_v17  ;;  %v3940_v10 = vld [vmem:[%s2187_s6 + $0x720] sm:$0xff]  ;;  %v1609_v16 = vadd.f32 %v1608_v61, %v1607_v4  ;;  %v1157_v17 = vmul.f32 %v3748_v22, %v3748_v22  ;;  %v1614_v29 = vsel %vm435_vm0, %v1156_v7, 0.0 }
 0x1d8   : > { %v891_v62 = vsel %vm435_vm0, %v3940_v10, 0.0 }
 0x1d9   : > { %v878_v0 = vadd.f32 %v877_v14, %v876_v26  ;;  %v3948_v14 = vld [vmem:[%s2187_s6 + $0x728] sm:$0xff]  ;;  %v1611_v25 = vadd.f32 %v1610_v8, %v1609_v16  ;;  %v1158_v26 = vmul.f32 %v3756_v31, %v3756_v31  ;;  %v1616_v1 = vsel %vm435_vm0, %v1157_v17, 0.0 }
 0x1da   : > { %v893_v11 = vsel %vm435_vm0, %v3948_v14, 0.0 }
 0x1db   : > { %v880_v41 = vadd.f32 %v879_v19, %v878_v0  ;;  %v3956_v19 = vld [vmem:[%s2187_s6 + $0x730] sm:$0xff]  ;;  %v1613_v35 = vadd.f32 %v1612_v20, %v1611_v25  ;;  %v1159_v0 = vmul.f32 %v3764_v2, %v3764_v2  ;;  %v1618_v6 = vsel %vm435_vm0, %v1158_v26, 0.0 }
 0x1dc   : > { %v895_v22 = vsel %vm435_vm0, %v3956_v19, 0.0 }
 0x1dd   : > { %v882_v47 = vadd.f32 %v881_v28, %v880_v41  ;;  %v3964_v28 = vld [vmem:[%s2187_s6 + $0x738] sm:$0xff]  ;;  %v1615_v38 = vadd.f32 %v1614_v29, %v1613_v35  ;;  %v1160_v41 = vmul.f32 %v3772_v43, %v3772_v43  ;;  %v1620_v49 = vsel %vm435_vm0, %v1159_v0, 0.0 }
 0x1de   : > { %v897_v31 = vsel %vm435_vm0, %v3964_v28, 0.0 }
 0x1df   : > { %v884_v56 = vadd.f32 %v883_v34, %v882_v47  ;;  %v3972_v34 = vld [vmem:[%s2187_s6 + $0x740] sm:$0xff]  ;;  %v1617_v44 = vadd.f32 %v1616_v1, %v1615_v38  ;;  %v1161_v47 = vmul.f32 %v3780_v50, %v3780_v50  ;;  %v1622_v58 = vsel %vm435_vm0, %v1160_v41, 0.0 }
 0x1e0   : > { %v899_v2 = vsel %vm435_vm0, %v3972_v34, 0.0 }
 0x1e1   : > { %v886_v3 = vadd.f32 %v885_v40, %v884_v56  ;;  %v3980_v40 = vld [vmem:[%s2187_s6 + $0x748] sm:$0xff]  ;;  %v1619_v53 = vadd.f32 %v1618_v6, %v1617_v44  ;;  %v1162_v56 = vmul.f32 %v3788_v12, %v3788_v12  ;;  %v1624_v4 = vsel %vm435_vm0, %v1161_v47, 0.0 }
 0x1e2   : > { %v901_v43 = vsel %vm435_vm0, %v3980_v40, 0.0 }
 0x1e3   : > { %v888_v13 = vadd.f32 %v887_v46, %v886_v3  ;;  %v3988_v46 = vld [vmem:[%s2187_s6 + $0x750] sm:$0xff]  ;;  %v1621_v61 = vadd.f32 %v1620_v49, %v1619_v53  ;;  %v1163_v3 = vmul.f32 %v3796_v15, %v3796_v15  ;;  %v1626_v16 = vsel %vm435_vm0, %v1162_v56, 0.0 }
 0x1e4   : > { %v903_v50 = vsel %vm435_vm0, %v3988_v46, 0.0 }
 0x1e5   : > { %v890_v23 = vadd.f32 %v889_v55, %v888_v13  ;;  %v3996_v55 = vld [vmem:[%s2187_s6 + $0x758] sm:$0xff]  ;;  %v1623_v8 = vadd.f32 %v1622_v58, %v1621_v61  ;;  %v1164_v13 = vmul.f32 %v3804_v18, %v3804_v18  ;;  %v1628_v25 = vsel %vm435_vm0, %v1163_v3, 0.0 }
 0x1e6   : > { %v905_v12 = vsel %vm435_vm0, %v3996_v55, 0.0 }
 0x1e7   : > { %v892_v32 = vadd.f32 %v891_v62, %v890_v23  ;;  %v4004_v62 = vld [vmem:[%s2187_s6 + $0x760] sm:$0xff]  ;;  %v1625_v20 = vadd.f32 %v1624_v4, %v1623_v8  ;;  %v1165_v23 = vmul.f32 %v3812_v21, %v3812_v21  ;;  %v1630_v35 = vsel %vm435_vm0, %v1164_v13, 0.0 }
 0x1e8   : > { %v907_v15 = vsel %vm435_vm0, %v4004_v62, 0.0 }
 0x1e9   : > { %v894_v37 = vadd.f32 %v893_v11, %v892_v32  ;;  %v4012_v11 = vld [vmem:[%s2187_s6 + $0x768] sm:$0xff]  ;;  %v1627_v29 = vadd.f32 %v1626_v16, %v1625_v20  ;;  %v1166_v32 = vmul.f32 %v3820_v24, %v3820_v24  ;;  %v1632_v38 = vsel %vm435_vm0, %v1165_v23, 0.0 }
 0x1ea   : > { %v909_v18 = vsel %vm435_vm0, %v4012_v11, 0.0 }
 0x1eb   : > { %v896_v9 = vadd.f32 %v895_v22, %v894_v37  ;;  %v4020_v22 = vld [vmem:[%s2187_s6 + $0x770] sm:$0xff]  ;;  %v1629_v1 = vadd.f32 %v1628_v25, %v1627_v29  ;;  %v1167_v37 = vmul.f32 %v3828_v27, %v3828_v27  ;;  %v1634_v44 = vsel %vm435_vm0, %v1166_v32, 0.0 }
 0x1ec   : > { %v911_v21 = vsel %vm435_vm0, %v4020_v22, 0.0 }
 0x1ed   : > { %v898_v52 = vadd.f32 %v897_v31, %v896_v9  ;;  %v4028_v31 = vld [vmem:[%s2187_s6 + $0x778] sm:$0xff]  ;;  %v1631_v6 = vadd.f32 %v1630_v35, %v1629_v1  ;;  %v1168_v9 = vmul.f32 %v3836_v30, %v3836_v30  ;;  %v1636_v53 = vsel %vm435_vm0, %v1167_v37, 0.0 }
 0x1ee   : > { %v913_v24 = vsel %vm435_vm0, %v4028_v31, 0.0 }
 0x1ef   : > { %v900_v59 = vadd.f32 %v899_v2, %v898_v52  ;;  %v4036_v2 = vld [vmem:[%s2187_s6 + $0x780] sm:$0xff]  ;;  %v1633_v49 = vadd.f32 %v1632_v38, %v1631_v6  ;;  %v1169_v52 = vmul.f32 %v3844_v33, %v3844_v33  ;;  %v1638_v61 = vsel %vm435_vm0, %v1168_v9, 0.0 }
 0x1f0   : > { %v915_v27 = vsel %vm435_vm0, %v4036_v2, 0.0 }
 0x1f1   : > { %v902_v7 = vadd.f32 %v901_v43, %v900_v59  ;;  %v4044_v43 = vld [vmem:[%s2187_s6 + $0x788] sm:$0xff]  ;;  %v1635_v58 = vadd.f32 %v1634_v44, %v1633_v49  ;;  %v1170_v59 = vmul.f32 %v3852_v36, %v3852_v36  ;;  %v1640_v8 = vsel %vm435_vm0, %v1169_v52, 0.0 }
 0x1f2   : > { %v917_v30 = vsel %vm435_vm0, %v4044_v43, 0.0 }
 0x1f3   : > { %v904_v17 = vadd.f32 %v903_v50, %v902_v7  ;;  %v4052_v50 = vld [vmem:[%s2187_s6 + $0x790] sm:$0xff]  ;;  %v1637_v4 = vadd.f32 %v1636_v53, %v1635_v58  ;;  %v1171_v7 = vmul.f32 %v3860_v39, %v3860_v39  ;;  %v1642_v20 = vsel %vm435_vm0, %v1170_v59, 0.0 }
 0x1f4   : > { %v919_v33 = vsel %vm435_vm0, %v4052_v50, 0.0 }
 0x1f5   : > { %v906_v26 = vadd.f32 %v905_v12, %v904_v17  ;;  %v4060_v12 = vld [vmem:[%s2187_s6 + $0x798] sm:$0xff]  ;;  %v1639_v16 = vadd.f32 %v1638_v61, %v1637_v4  ;;  %v1172_v17 = vmul.f32 %v3868_v42, %v3868_v42  ;;  %v1644_v29 = vsel %vm435_vm0, %v1171_v7, 0.0 }
 0x1f6   : > { %v921_v36 = vsel %vm435_vm0, %v4060_v12, 0.0 }
 0x1f7   : > { %v908_v0 = vadd.f32 %v907_v15, %v906_v26  ;;  %v4068_v15 = vld [vmem:[%s2187_s6 + $0x7a0] sm:$0xff]  ;;  %v1641_v25 = vadd.f32 %v1640_v8, %v1639_v16  ;;  %v1173_v26 = vmul.f32 %v3876_v45, %v3876_v45  ;;  %v1646_v1 = vsel %vm435_vm0, %v1172_v17, 0.0 }
 0x1f8   : > { %v923_v39 = vsel %vm435_vm0, %v4068_v15, 0.0 }
 0x1f9   : > { %v910_v41 = vadd.f32 %v909_v18, %v908_v0  ;;  %v4076_v18 = vld [vmem:[%s2187_s6 + $0x7a8] sm:$0xff]  ;;  %v1643_v35 = vadd.f32 %v1642_v20, %v1641_v25  ;;  %v1174_v0 = vmul.f32 %v3884_v48, %v3884_v48  ;;  %v1648_v6 = vsel %vm435_vm0, %v1173_v26, 0.0 }
 0x1fa   : > { %v925_v42 = vsel %vm435_vm0, %v4076_v18, 0.0 }
 0x1fb   : > { %v912_v47 = vadd.f32 %v911_v21, %v910_v41  ;;  %v4084_v21 = vld [vmem:[%s2187_s6 + $0x7b0] sm:$0xff]  ;;  %v1645_v38 = vadd.f32 %v1644_v29, %v1643_v35  ;;  %v1175_v41 = vmul.f32 %v3892_v51, %v3892_v51  ;;  %v1650_v49 = vsel %vm435_vm0, %v1174_v0, 0.0 }
 0x1fc   : > { %v927_v45 = vsel %vm435_vm0, %v4084_v21, 0.0 }
 0x1fd   : > { %v914_v56 = vadd.f32 %v913_v24, %v912_v47  ;;  %v4092_v24 = vld [vmem:[%s2187_s6 + $0x7b8] sm:$0xff]  ;;  %v1647_v44 = vadd.f32 %v1646_v1, %v1645_v38  ;;  %v1176_v47 = vmul.f32 %v3900_v54, %v3900_v54  ;;  %v1652_v58 = vsel %vm435_vm0, %v1175_v41, 0.0 }
 0x1fe   : > { %v929_v48 = vsel %vm435_vm0, %v4092_v24, 0.0 }
 0x1ff   : > { %v916_v3 = vadd.f32 %v915_v27, %v914_v56  ;;  %v4100_v27 = vld [vmem:[%s2187_s6 + $0x7c0] sm:$0xff]  ;;  %v1649_v53 = vadd.f32 %v1648_v6, %v1647_v44  ;;  %v1177_v56 = vmul.f32 %v3908_v57, %v3908_v57  ;;  %v1654_v4 = vsel %vm435_vm0, %v1176_v47, 0.0 }
 0x200   : > { %v931_v51 = vsel %vm435_vm0, %v4100_v27, 0.0 }
 0x201   : > { %v918_v13 = vadd.f32 %v917_v30, %v916_v3  ;;  %v4108_v30 = vld [vmem:[%s2187_s6 + $0x7c8] sm:$0xff]  ;;  %v1651_v61 = vadd.f32 %v1650_v49, %v1649_v53  ;;  %v1178_v3 = vmul.f32 %v3916_v60, %v3916_v60  ;;  %v1656_v16 = vsel %vm435_vm0, %v1177_v56, 0.0 }
 0x202   : > { %v933_v54 = vsel %vm435_vm0, %v4108_v30, 0.0 }
 0x203   : > { %v920_v23 = vadd.f32 %v919_v33, %v918_v13  ;;  %v4116_v33 = vld [vmem:[%s2187_s6 + $0x7d0] sm:$0xff]  ;;  %v1653_v8 = vadd.f32 %v1652_v58, %v1651_v61  ;;  %v1179_v13 = vmul.f32 %v3924_v63, %v3924_v63  ;;  %v1658_v25 = vsel %vm435_vm0, %v1178_v3, 0.0 }
 0x204   : > { %v935_v57 = vsel %vm435_vm0, %v4116_v33, 0.0  ;;  %v1185_v58 = vmul.f32 %v3972_v34, %v3972_v34  ;;  %v1188_v34 = vmul.f32 %v3996_v55, %v3996_v55  ;;  %v1191_v55 = vmul.f32 %v4020_v22, %v4020_v22 }
 0x205   : > { %v922_v32 = vadd.f32 %v921_v36, %v920_v23  ;;  %v4124_v36 = vld [vmem:[%s2187_s6 + $0x7d8] sm:$0xff]  ;;  %v1655_v20 = vadd.f32 %v1654_v4, %v1653_v8  ;;  %v1180_v23 = vmul.f32 %v3932_v5, %v3932_v5  ;;  %v1660_v35 = vsel %vm435_vm0, %v1179_v13, 0.0 }
 0x206   : > { %v937_v60 = vsel %vm435_vm0, %v4124_v36, 0.0  ;;  %v1672_v8 = vsel %vm435_vm0, %v1185_v58, 0.0  ;;  %v1194_v22 = vmul.f32 %v4044_v43, %v4044_v43  ;;  %v1200_v58 = vmul.f32 %v4092_v24, %v4092_v24 }
 0x207   : > { %v924_v37 = vadd.f32 %v923_v39, %v922_v32  ;;  %v4132_v39 = vld [vmem:[%s2187_s6 + $0x7e0] sm:$0xff]  ;;  %v1657_v29 = vadd.f32 %v1656_v16, %v1655_v20  ;;  %v1181_v32 = vmul.f32 %v3940_v10, %v3940_v10  ;;  %v1662_v38 = vsel %vm435_vm0, %v1180_v23, 0.0 }
 0x208   : > { %v939_v63 = vsel %vm435_vm0, %v4132_v39, 0.0 }
 0x209   : > { %v926_v9 = vadd.f32 %v925_v42, %v924_v37  ;;  %v4140_v42 = vld [vmem:[%s2187_s6 + $0x7e8] sm:$0xff]  ;;  %v1659_v1 = vadd.f32 %v1658_v25, %v1657_v29  ;;  %v1182_v37 = vmul.f32 %v3948_v14, %v3948_v14  ;;  %v1664_v44 = vsel %vm435_vm0, %v1181_v32, 0.0 }
 0x20a   : > { %v941_v5 = vsel %vm435_vm0, %v4140_v42, 0.0 }
 0x20b   : > { %v928_v52 = vadd.f32 %v927_v45, %v926_v9  ;;  %v4148_v45 = vld [vmem:[%s2187_s6 + $0x7f0] sm:$0xff]  ;;  %v1661_v6 = vadd.f32 %v1660_v35, %v1659_v1  ;;  %v1183_v9 = vmul.f32 %v3956_v19, %v3956_v19  ;;  %v1666_v53 = vsel %vm435_vm0, %v1182_v37, 0.0 }
 0x20c   : > { %v943_v10 = vsel %vm435_vm0, %v4148_v45, 0.0  ;;  %v1684_v37 = vsel %vm435_vm0, %v1191_v55, 0.0 }
 0x20d   : > { %v930_v59 = vadd.f32 %v929_v48, %v928_v52  ;;  %v4156_v48 = vld [vmem:[%s2187_s6 + $0x7f8] sm:$0xff]  ;;  %v1663_v49 = vadd.f32 %v1662_v38, %v1661_v6  ;;  %v1184_v52 = vmul.f32 %v3964_v28, %v3964_v28  ;;  %v1668_v19 = vsel %vm435_vm0, %v1183_v9, 0.0 }
 0x20e   : > { %v945_v14 = vsel %vm435_vm0, %v4156_v48, 0.0  ;;  %v1187_v28 = vmul.f32 %v3988_v46, %v3988_v46  ;;  %v1190_v46 = vmul.f32 %v4012_v11, %v4012_v11  ;;  %v1193_v11 = vmul.f32 %v4036_v2, %v4036_v2 }
 0x20f   : > { %v932_v7 = vadd.f32 %v931_v51, %v930_v59  ;;  %v1665_v56 = vadd.f32 %v1664_v44, %v1663_v49  ;;  %v1670_v3 = vsel %vm435_vm0, %v1184_v52, 0.0  ;;  %v1196_v44 = vmul.f32 %v4060_v12, %v4060_v12 }
 0x210   : > { %v1682_v1 = vsel %vm435_vm0, %v1190_v46, 0.0  ;;  %v1690_v2 = vsel %vm435_vm0, %v1194_v22, 0.0  ;;  %v1197_v49 = vmul.f32 %v4068_v15, %v4068_v15  ;;  %v1198_v52 = vmul.f32 %v4076_v18, %v4076_v18 }
 0x211   : > { %v934_v17 = vadd.f32 %v933_v54, %v932_v7  ;;  %v1667_v61 = vadd.f32 %v1666_v53, %v1665_v56  ;;  %v1186_v54 = vmul.f32 %v3980_v40, %v3980_v40  ;;  %v1189_v40 = vmul.f32 %v4004_v62, %v4004_v62 }
 0x212   : > { %v1192_v62 = vmul.f32 %v4028_v31, %v4028_v31  ;;  %v1688_v31 = vsel %vm435_vm0, %v1193_v11, 0.0  ;;  %v1696_v12 = vsel %vm435_vm0, %v1197_v49, 0.0  ;;  %v1698_v15 = vsel %vm435_vm0, %v1198_v52, 0.0 }
 0x213   : > { %v936_v26 = vadd.f32 %v935_v57, %v934_v17  ;;  %v1669_v7 = vadd.f32 %v1668_v19, %v1667_v61  ;;  %v1674_v16 = vsel %vm435_vm0, %v1186_v54, 0.0  ;;  %v1680_v32 = vsel %vm435_vm0, %v1189_v40, 0.0 }
 0x214   : > { %v1202_v54 = vmul.f32 %v4108_v30, %v4108_v30 }
 0x215   : > { %v938_v0 = vadd.f32 %v937_v60, %v936_v26  ;;  %v1671_v13 = vadd.f32 %v1670_v3, %v1669_v7  ;;  %v1676_v60 = vsel %vm435_vm0, %v1187_v28, 0.0  ;;  %v1678_v26 = vsel %vm435_vm0, %v1188_v34, 0.0 }
 0x216   : > { %v1204_v28 = vmul.f32 %v4124_v36, %v4124_v36  ;;  %v1206_v34 = vmul.f32 %v4140_v42, %v4140_v42 }
 0x217   : > { %v940_v41 = vadd.f32 %v939_v63, %v938_v0  ;;  %v1673_v20 = vadd.f32 %v1672_v8, %v1671_v13 }
 0x218   : > { %v1714_v40 = vsel %vm435_vm0, %v1206_v34, 0.0 }
 0x219   : > { %v942_v47 = vadd.f32 %v941_v5, %v940_v41  ;;  %v1675_v25 = vadd.f32 %v1674_v16, %v1673_v20  ;;  %v1686_v41 = vsel %vm435_vm0, %v1192_v62, 0.0 }
 0x21b   : > { %v944_v51 = vadd.f32 %v943_v10, %v942_v47  ;;  %v1677_v63 = vadd.f32 %v1676_v60, %v1675_v25  ;;  %v1195_v10 = vmul.f32 %v4052_v50, %v4052_v50  ;;  %v1694_v50 = vsel %vm435_vm0, %v1196_v44, 0.0 }
 0x21d   : > { %v946_v59 = vadd.f32 %v945_v14, %v944_v51  ;;  %v1679_v0 = vadd.f32 %v1678_v26, %v1677_v63  ;;  %v1692_v43 = vsel %vm435_vm0, %v1195_v10, 0.0  ;;  %v1199_v51 = vmul.f32 %v4084_v21, %v4084_v21 }
 0x21e   : > { %v1702_v21 = vsel %vm435_vm0, %v1200_v58, 0.0 }
 0x21f   : > { %v947_v4 = vrot.slane %v946_v59, 4  ;;  %v1681_v5 = vadd.f32 %v1680_v32, %v1679_v0  ;;  %v1700_v18 = vsel %vm435_vm0, %v1199_v51, 0.0 }
 0x221   : > { %v948_v57 = vadd.f32 %v947_v4, %v946_v59  ;;  %v1683_v38 = vadd.f32 %v1682_v1, %v1681_v5  ;;  %v1201_v59 = vmul.f32 %v4100_v27, %v4100_v27  ;;  %v1203_v4 = vmul.f32 %v4116_v33, %v4116_v33 }
 0x222   : > { %v1706_v27 = vsel %vm435_vm0, %v1202_v54, 0.0  ;;  %v1710_v33 = vsel %vm435_vm0, %v1204_v28, 0.0 }
 0x223   : > { %v949_v17 = vrot.slane %v948_v57, 2  ;;  %v1685_v6 = vadd.f32 %v1684_v37, %v1683_v38  ;;  %v1704_v24 = vsel %vm435_vm0, %v1201_v59, 0.0  ;;  %v1708_v30 = vsel %vm435_vm0, %v1203_v4, 0.0 }
 0x225   : > { %v950_v23 = vadd.f32 %v949_v17, %v948_v57  ;;  %v1687_v9 = vadd.f32 %v1686_v41, %v1685_v6  ;;  %v1205_v57 = vmul.f32 %v4132_v39, %v4132_v39  ;;  %v1207_v17 = vmul.f32 %v4148_v45, %v4148_v45 }
 0x226   : > { %v1208_v39 = vmul.f32 %v4156_v48, %v4156_v48 }
 0x227   : > { %v951_v29 = vrot.slane %v950_v23, 1  ;;  %v1689_v47 = vadd.f32 %v1688_v31, %v1687_v9  ;;  %v1712_v36 = vsel %vm435_vm0, %v1205_v57, 0.0 }
 0x228   : > { %v1718_v25 = vsel %vm435_vm0, %v1208_v39, 0.0 }
 0x229   : > { %v4184_v35 = vadd.f32 %v951_v29, %v950_v23  ;;  %v1691_v14 = vadd.f32 %v1690_v2, %v1689_v47  ;;  %v1716_v23 = vsel %vm435_vm0, %v1207_v17, 0.0 }
 0x22b   : > { %v1693_v53 = vadd.f32 %v1692_v43, %v1691_v14  ;;  %1731 = vst.msk [vmem:[%s162_s7] sm:$0x1] (!%p1882_p0), %vm1730_vm1, %v4184_v35 }
 0x22d   : > { %v1695_v56 = vadd.f32 %v1694_v50, %v1693_v53 }
 0x22f   : > { %v1697_v19 = vadd.f32 %v1696_v12, %v1695_v56 }
 0x231   : > { %v1699_v61 = vadd.f32 %v1698_v15, %v1697_v19 }
 0x233   : > { %v1701_v3 = vadd.f32 %v1700_v18, %v1699_v61 }
 0x235   : > { %v1703_v7 = vadd.f32 %v1702_v21, %v1701_v3 }
 0x237   : > { %v1705_v8 = vadd.f32 %v1704_v24, %v1703_v7 }
 0x239   : > { %v1707_v13 = vadd.f32 %v1706_v27, %v1705_v8 }
 0x23b   : > { %v1709_v16 = vadd.f32 %v1708_v30, %v1707_v13 }
 0x23d   : > { %v1711_v20 = vadd.f32 %v1710_v33, %v1709_v16 }
 0x23f   : > { %v1713_v60 = vadd.f32 %v1712_v36, %v1711_v20 }
 0x241   : > { %v1715_v42 = vadd.f32 %v1714_v40, %v1713_v60 }
 0x243   : > { %v1717_v46 = vadd.f32 %v1716_v23, %v1715_v42 }
 0x245   : > { %v1719_v26 = vadd.f32 %v1718_v25, %v1717_v46 }
 0x247   : > { %v1720_v29 = vrot.slane %v1719_v26, 4 }
 0x249   : > { %v1721_v45 = vadd.f32 %v1720_v29, %v1719_v26 }
 0x24b   : > { %v1722_v63 = vrot.slane %v1721_v45, 2  ;;  %1729 = sbr.rel (%p1882_p0) target bundleno = 596 (0x254), region = 28 }
 0x24d   : > { %v1723_v55 = vadd.f32 %v1722_v63, %v1721_v45 }
 0x24f   : > { %v1724_v32 = vrot.slane %v1723_v55, 1 }
 0x251   : > { %v1725_v0 = vadd.f32 %v1724_v32, %v1723_v55 }
 0x253   : > { %1732 = vst.msk [vmem:[%s4241_s8] sm:$0x1] %vm1730_vm1, %v1725_v0 }
 0x254 PF: > { %p1883_p1 = scmp.eq.s32.totalorder %s2074_s12, 0 }
 0x255   : > { %v1737_v48 = vld [vmem:[%s162_s7] sm:$0x1] (!%p1883_p1)  ;;  %vm1739_vm2 = vcmask (!%p1883_p1), 24576  }
 0x256   : > { %1736 = sbr.rel (%p1883_p1) target bundleno = 606 (0x25e), region = 32  ;;  %v1738_v1 = vadd.f32 (!%p1883_p1), %v1737_v48, %v4184_v35 }
 0x258   : > { %1740 = vst.msk [vmem:[%s162_s7] sm:$0x1] (!%p1883_p1), %vm1739_vm2, %v1738_v1 }
 0x25a   : > { %v1741_v62 = vld [vmem:[%s4241_s8] sm:$0x1] (!%p1883_p1) }
 0x25b   : > { %v1742_v5 = vadd.f32 (!%p1883_p1), %v1741_v62, %v1725_v0 }
 0x25d   : > { %1743 = vst.msk [vmem:[%s4241_s8] sm:$0x1] %vm1739_vm2, %v1742_v5 }
 0x25e PF: > { %s1884_s17 = sshll.u32 %s2078_s13, 4  ;;  %s1761_s24 = sshll.u32 %s162_s7, 4  ;;  %s1762_s24 = int_to_ptr.vmem [resolvable:$true] %s1761_s24 }
 0x25f   : > { %s4256_s23 = scalar_lea.hbm %s4331_s1, %s1884_s17  ;;  %s1745_s27 = scalar_lea.sflag [#allocation3], %s2179_s26 }
 0x260   : > { %s1964_s28 = scalar_lea.vmem %s1762_s24, 16  ;;  %s2092_s29 = smov [#allocation2]  }
 0x261   : > { %p1965_p2 = scmp.ne.s32.totalorder %s1762_s24, %s1964_s28  ;;  %s1968_s30 = sshll.u32 %s2092_s29, 4  ;;  %s1969_s30 = int_to_ptr.vmem [resolvable:$false] %s1968_s30 }
 0x262   : > { %s1970_s3 = scalar_lea.vmem %s1969_s30, 32  ;;  %p1971_p6 = scmp.lt.s32.totalorder %s1762_s24, %s1969_s30 }
 0x263   : > { %p1966_p4 = pnand %p1965_p2, %p2158_p3  ;;  %p1972_p7 = scmp.lt.s32.totalorder %s1970_s3, %s1964_s28 }
 0x265   : > { %p1967_p5 = pneg %p1966_p4  ;;  %p1973_p8 = por %p1972_p7, %p1971_p6 }
 0x267   : > { %p1974_p10 = pnand %p1973_p8, %p1967_p5 }
 0x269   : > { %1977 = shalt.err (!%p1974_p10)
}
 0x26a   : > { %s1978_s4 = scalar_lea.hbm %s4256_s23, 16  ;;  %s1982_s7 = scalar_lea.hbm %s4331_s1, 32 }
 0x26b   : > { %p1979_p11 = scmp.ne.s32.totalorder %s4256_s23, %s1978_s4  ;;  %p1983_p0 = scmp.lt.u32.totalorder %s4256_s23, %s4331_s1 }
 0x26c   : > { %p1984_p1 = scmp.lt.u32.totalorder %s1982_s7, %s1978_s4  ;;  %p1986_p4 = scmp.lt.u32.totalorder %s1978_s4, %s4256_s23 }
 0x26d   : > { %p1980_p12 = pnand %p1979_p11, %p2158_p3 }
 0x26e   : > { %p1985_p2 = por %p1984_p1, %p1983_p0 }
 0x26f   : > { %p1981_p13 = pneg %p1980_p12 }
 0x270   : > { %p1987_p5 = por %p1986_p4, %p1985_p2 }
 0x272   : > { %p1988_p6 = pnand %p1987_p5, %p1981_p13 }
 0x274   : > { %1991 = shalt.err (!%p1988_p6)
}
 0x275   : > { %1888 = dma.vmem_to_hbm [thread:$0]  (%p2158_p3), %s1762_s24, 16, %s4256_s23, %s1745_s27  }
 0x276   : > { %s4281_s30 = scalar_lea.hbm %s4332_s2, %s1884_s17  ;;  %s1774_s3 = sshll.u32 %s4241_s8, 4  ;;  %s1775_s3 = int_to_ptr.vmem [resolvable:$true] %s1774_s3 }
 0x277   : > { %s1749_s4 = scalar_lea.sflag [#allocation5], %s2179_s26  ;;  %s1992_s5 = scalar_lea.vmem %s1775_s3, 16 }
 0x278   : > { %p1993_p7 = scmp.ne.s32.totalorder %s1775_s3, %s1992_s5  ;;  %s2093_s6 = smov [#allocation4]  }
 0x279   : > { %s1996_s7 = sshll.u32 %s2093_s6, 4  ;;  %s1997_s7 = int_to_ptr.vmem [resolvable:$false] %s1996_s7 }
 0x27a   : > { %p1994_p8 = pnand %p1993_p7, %p2158_p3  ;;  %s1998_s18 = scalar_lea.vmem %s1997_s7, 32 }
 0x27b   : > { %p1999_p11 = scmp.lt.s32.totalorder %s1775_s3, %s1997_s7  ;;  %p2000_p12 = scmp.lt.s32.totalorder %s1998_s18, %s1992_s5 }
 0x27c   : > { %p1995_p10 = pneg %p1994_p8 }
 0x27d   : > { %p2001_p13 = por %p2000_p12, %p1999_p11 }
 0x27f   : > { %p2002_p0 = pnand %p2001_p13, %p1995_p10 }
 0x281   : > { %2005 = shalt.err (!%p2002_p0)
}
 0x282   : > { %s2006_s13 = scalar_lea.hbm %s4281_s30, 16  ;;  %s2010_s17 = scalar_lea.hbm %s4332_s2, 32 }
 0x283   : > { %p2007_p1 = scmp.ne.s32.totalorder %s4281_s30, %s2006_s13  ;;  %p2011_p5 = scmp.lt.u32.totalorder %s4281_s30, %s4332_s2 }
 0x284   : > { %p2012_p6 = scmp.lt.u32.totalorder %s2010_s17, %s2006_s13  ;;  %p2014_p8 = scmp.lt.u32.totalorder %s2006_s13, %s4281_s30 }
 0x285   : > { %p2008_p2 = pnand %p2007_p1, %p2158_p3 }
 0x286   : > { %p2013_p7 = por %p2012_p6, %p2011_p5 }
 0x287   : > { %p2009_p4 = pneg %p2008_p2 }
 0x288   : > { %p2015_p10 = por %p2014_p8, %p2013_p7 }
 0x28a   : > { %p2016_p11 = pnand %p2015_p10, %p2009_p4 }
 0x28c   : > { %2019 = shalt.err (!%p2016_p11)
}
 0x28d   : > { %1889 = dma.vmem_to_hbm [thread:$0]  (%p2158_p3), %s1775_s3, 16, %s4281_s30, %s1749_s4  }
 0x28e PF: > { %p1899_p12 = scmp.ge.s32.totalorder %s2090_s16, 2  ;;  %s1786_s27 = sand.u32 1, %s2062_s9  }
 0x28f   : > { %s1787_s12 = scalar_lea.sflag [#allocation3], %s1786_s27 }
 0x290   : > { %p1893_p13 = pnand %p1899_p12, %p2168_p9 }
 0x292   : > { %2053 = dma.done.wait (!%p1893_p13), %s1787_s12, 16  }
 0x293   : > { %2055 = vsyncadd (!%p1893_p13), %s1787_s12, 4294967280  ;;  %s1795_s28 = scalar_lea.sflag [#allocation5], %s1786_s27 }
 0x294   : > { %2057 = dma.done.wait (!%p1893_p13), %s1795_s28, 16  }
 0x295   : > { %2059 = vsyncadd (!%p1893_p13), %s1795_s28, 4294967280  ;;  %s19_s16 = sadd.s32 1, %s2090_s16   ;;  %s4335_s9 = smov %s2066_s10 }
 0x296   : > { %p16_p0 = scmp.ge.s32.totalorder %s19_s16, 6   ;;  %s4336_s10 = smov %s2070_s11 }
 0x297   : > { %s4337_s11 = smov %s2176_s25  ;;  %s4338_s12 = smov %s2082_s14 }
 0x298   : > { %s4339_s13 = smov %s2086_s15  ;;  %s4340_s14 = smov %s4343_s19 }
 0x299   : > { %s4341_s15 = smov %s4347_s20  ;;  %18 = sbr.rel (!%p16_p0) target bundleno = 7 (0x7), region = 84 }
 0x2a0   :  { %1799 = vsyncpa [#allocation3], 1 }
 0x2a1   :  { %1801 = vsyncpa [#allocation3 + $0x1], 1 }
 0x2a2   :  { %1802 = vsyncpa [#allocation5], 1 }
 0x2a3   :  { %1804 = vsyncpa [#allocation5 + $0x1], 1 }

</bundles_post_ra>
